<compile_context>
chip_gen: v7x
topology: tpu7x:2x2x1
jax: 0.10.0
libtpu: 0.0.40
codegen_flags: <defaults>
</compile_context>

<pallas_src>
import jax
import jax.numpy as jnp
from jax.experimental import pallas as pl
from jax.experimental.pallas import tpu as pltpu

LN_EPS = 1e-5  # PyTorch nn.LayerNorm default

# layer dims of the module (encoder then decoder); input_size is filled at call time
_ENC_DIMS = lambda d: [(d, 80), (80, 64), (64, 48), (48, 2)]
_DEC_DIMS = lambda d: [(2, 48), (48, 64), (64, 80), (80, d)]


def wae_kernel(x_ref, w_ref, b_ref, g_ref, bt_ref, xrecon_ref, z_ref):
    """One batch tile of the full encoder->decoder chain.

    Invariant: every hidden value `h` is (TB, 128) with features in the
    leading `n` lanes and *exact zeros* in the padded lanes (weights, biases,
    gammas and betas are zero-padded to 128, so the invariant is preserved by
    Linear, LayerNorm (gamma folded, pad-gamma = 0) and ReLU).
    """
    D = x_ref.shape[-1]
    f32 = jnp.float32
    x = x_ref[...].astype(f32)

    def bias(i):
        return b_ref[i:i + 1, :]          # (1, 128)

    def ln_relu(h, i, nfeat):
        # one-pass mean / mean-of-squares (padded lanes are exact zeros, so
        # summing over all 128 lanes equals summing over the nfeat valid ones)
        inv_n = 1.0 / float(nfeat)
        mu = jnp.sum(h, axis=-1, keepdims=True) * inv_n
        msq = jnp.sum(h * h, axis=-1, keepdims=True) * inv_n
        var = msq - mu * mu
        s = jax.lax.rsqrt(var + LN_EPS) * g_ref[i:i + 1, :]   # gamma folded in
        return jnp.maximum((h - mu) * s + bt_ref[i:i + 1, :], 0.0)

    # ---------------- encoder ----------------
    h = jnp.dot(x, w_ref[0, 0:D, :], preferred_element_type=f32) + bias(0)
    h = ln_relu(h, 0, 80)
    h = jnp.dot(h, w_ref[1], preferred_element_type=f32) + bias(1)
    h = ln_relu(h, 1, 64)
    h = jnp.dot(h, w_ref[2], preferred_element_type=f32) + bias(2)
    h = ln_relu(h, 2, 48)
    zf = jnp.dot(h, w_ref[3], preferred_element_type=f32) + bias(3)  # lanes 0..1 valid
    z_ref[...] = zf[:, 0:2].astype(z_ref.dtype)

    # ---------------- decoder ----------------
    # K=2 contraction done on the VPU (two broadcast FMAs) instead of the MXU.
    h = (zf[:, 0:1] * w_ref[4, 0:1, :]
         + zf[:, 1:2] * w_ref[4, 1:2, :]
         + bias(4))
    h = ln_relu(h, 3, 48)
    h = jnp.dot(h, w_ref[5], preferred_element_type=f32) + bias(5)
    h = ln_relu(h, 4, 64)
    h = jnp.dot(h, w_ref[6], preferred_element_type=f32) + bias(6)
    h = ln_relu(h, 5, 80)
    logits = jnp.dot(h, w_ref[7], preferred_element_type=f32) + bias(7)

    # softmax over the first D (valid) lanes only
    lane = jax.lax.broadcasted_iota(jnp.int32, logits.shape, 1)
    lm = jnp.where(lane < D, logits, jnp.float32(-1e30))
    m = jnp.max(lm, axis=-1, keepdims=True)
    e = jnp.exp(lm - m)                                   # padded lanes -> 0
    denom = jnp.sum(e, axis=-1, keepdims=True)
    r = pl.reciprocal(denom, approx=True)
    r = r * (2.0 - denom * r)                             # one Newton step
    probs = e * r
    xrecon_ref[...] = probs[:, 0:D].astype(xrecon_ref.dtype)


def init_wae_params(key, input_size, dtype=jnp.float32):
    """Deterministic synthetic parameter init (shapes match the PyTorch module)."""
    enc_dims = _ENC_DIMS(input_size)
    dec_dims = _DEC_DIMS(input_size)
    params = {"enc": [], "dec": []}

    def make_linear(k, din, dout):
        kw, kb = jax.random.split(k)
        w = (jax.random.normal(kw, (din, dout), dtype) * 0.05).astype(dtype)
        b = (jax.random.normal(kb, (1, dout), dtype) * 0.01).astype(dtype)
        return w, b

    def make_ln(dout):
        return jnp.ones((1, dout), dtype), jnp.zeros((1, dout), dtype)

    keys = jax.random.split(key, 8)
    for i, (din, dout) in enumerate(enc_dims):
        w, b = make_linear(keys[i], din, dout)
        if i < 3:
            g, bt = make_ln(dout)
            params["enc"].append((w, b, g, bt))
        else:
            params["enc"].append((w, b))
    for i, (din, dout) in enumerate(dec_dims):
        w, b = make_linear(keys[4 + i], din, dout)
        if i < 3:
            g, bt = make_ln(dout)
            params["dec"].append((w, b, g, bt))
        else:
            params["dec"].append((w, b))
    return params


def _pack_params(params, input_size):
    """Pack the 30 small parameter arrays into 4 zero-padded, 128-lane slabs."""
    all_dims = _ENC_DIMS(input_size) + _DEC_DIMS(input_size)
    layers = list(params["enc"]) + list(params["dec"])
    W = jnp.zeros((8, 128, 128), jnp.float32)
    Bv = jnp.zeros((8, 128), jnp.float32)
    G = jnp.zeros((6, 128), jnp.float32)
    BT = jnp.zeros((6, 128), jnp.float32)
    ln_i = 0
    for i, (layer, (din, dout)) in enumerate(zip(layers, all_dims)):
        w, b = layer[0], layer[1]
        W = W.at[i, :din, :dout].set(w.astype(jnp.float32))
        Bv = Bv.at[i, :dout].set(b.reshape(-1).astype(jnp.float32))
        if len(layer) == 4:
            g, bt = layer[2], layer[3]
            G = G.at[ln_i, :dout].set(g.reshape(-1).astype(jnp.float32))
            BT = BT.at[ln_i, :dout].set(bt.reshape(-1).astype(jnp.float32))
            ln_i += 1
    return W, Bv, G, BT


def _round_up(a, m):
    return (a + m - 1) // m * m


def wae_forward(x, params, *, block_rows=512):
    """Returns (x_recon, z) — same semantics as WAE.forward."""
    B, D = x.shape
    assert D <= 128, "this kernel packs features into a single 128-lane tile"
    W, Bv, G, BT = _pack_params(params, D)

    # batch tile: big enough to amortize per-step overhead, multiple of 8
    TB = block_rows if B >= block_rows else _round_up(B, 8)
    B_pad = _round_up(B, TB)
    x_in = x if B_pad == B else jnp.zeros((B_pad, D), x.dtype).at[:B].set(x)
    grid = (B_pad // TB,)

    out_shapes = (
        jax.ShapeDtypeStruct((B_pad, D), jnp.float32),  # x_recon (padded)
        jax.ShapeDtypeStruct((B_pad, 2), jnp.float32),  # z       (padded)
    )

    f = pl.pallas_call(
        wae_kernel,
        out_shape=out_shapes,
        grid_spec=pltpu.PrefetchScalarGridSpec(
            num_scalar_prefetch=0,
            grid=grid,
            in_specs=[
                pl.BlockSpec((TB, D), lambda i: (i, 0)),          # x tile
                pl.BlockSpec((8, 128, 128), lambda i: (0, 0, 0)),  # weight slab
                pl.BlockSpec((8, 128), lambda i: (0, 0)),          # bias slab
                pl.BlockSpec((6, 128), lambda i: (0, 0)),          # gamma slab
                pl.BlockSpec((6, 128), lambda i: (0, 0)),          # beta slab
            ],
            out_specs=(
                pl.BlockSpec((TB, D), lambda i: (i, 0)),
                pl.BlockSpec((TB, 2), lambda i: (i, 0)),
            ),
        ),
        compiler_params=pltpu.CompilerParams(
            dimension_semantics=("parallel",)),
    )
    x_recon, z = f(x_in, W, Bv, G, BT)
    return x_recon[:B], z[:B]


def wae_forward_ref(x, params):
    """Pure-JAX reference for correctness checking."""
    def linear(h, w, b):
        return h @ w + b

    def layernorm(h, g, bt):
        mu = jnp.mean(h, axis=-1, keepdims=True)
        var = jnp.mean((h - mu) ** 2, axis=-1, keepdims=True)
        return (h - mu) / jnp.sqrt(var + LN_EPS) * g + bt

    h = x.astype(jnp.float32)
    for i, layer in enumerate(params["enc"]):
        if i < 3:
            w, b, g, bt = layer
            h = jax.nn.relu(layernorm(linear(h, w, b), g, bt))
        else:
            w, b = layer
            h = linear(h, w, b)
    z = h
    for i, layer in enumerate(params["dec"]):
        if i < 3:
            w, b, g, bt = layer
            h = jax.nn.relu(layernorm(linear(h, w, b), g, bt))
        else:
            w, b = layer
            h = jax.nn.softmax(linear(h, w, b), axis=1)
    return h, z


if __name__ == "__main__":
    key = jax.random.PRNGKey(0)
    k_x, k_p = jax.random.split(key)

    batch = 200          # not a multiple of the tile -> exercises padding
    input_size = 16      # WAE(input_size=16)

    x = jax.random.uniform(k_x, (batch, input_size), jnp.float32)
    params = init_wae_params(k_p, input_size)

    # small block_rows so the test exercises a multi-step grid (4 steps)
    x_recon, z = wae_forward(x, params, block_rows=64)
    jax.block_until_ready((x_recon, z))

    # sanity check against pure-JAX reference
    xr_ref, z_ref = wae_forward_ref(x, params)
    assert x_recon.shape == (batch, input_size)
    assert z.shape == (batch, 2)
    assert jnp.allclose(x_recon, xr_ref, atol=2e-5, rtol=2e-5)
    assert jnp.allclose(z, z_ref, atol=2e-5, rtol=2e-5)

    print("KERNEL_OK")
</pallas_src>

<mosaic_0001>
module attributes {stable_mosaic.version = 11 : i64} {
  func.func @wae_kernel(%arg0: i32, %arg1: memref<64x16xf32, #tpu.memory_space<vmem>>, %arg2: memref<8x128x128xf32, #tpu.memory_space<vmem>>, %arg3: memref<8x128xf32, #tpu.memory_space<vmem>>, %arg4: memref<6x128xf32, #tpu.memory_space<vmem>>, %arg5: memref<6x128xf32, #tpu.memory_space<vmem>>, %arg6: memref<64x16xf32, #tpu.memory_space<vmem>>, %arg7: memref<64x2xf32, #tpu.memory_space<vmem>>) attributes {dimension_semantics = [#tpu.dimension_semantics<parallel>], iteration_bounds = array<i64: 4>, scalar_prefetch = 0 : i64, scratch_operands = 0 : i64, tpu.core_type = #tpu.core_type<tc>, window_params = [{transform_indices = @transform_0, window_bounds = array<i64: 64, 16>}, {pipeline_mode = #tpu.pipeline_mode<synchronous>, transform_indices = @transform_1, window_bounds = array<i64: 8, 128, 128>}, {pipeline_mode = #tpu.pipeline_mode<synchronous>, transform_indices = @transform_2, window_bounds = array<i64: 8, 128>}, {pipeline_mode = #tpu.pipeline_mode<synchronous>, transform_indices = @transform_3, window_bounds = array<i64: 6, 128>}, {pipeline_mode = #tpu.pipeline_mode<synchronous>, transform_indices = @transform_4, window_bounds = array<i64: 6, 128>}, {transform_indices = @transform_5, window_bounds = array<i64: 64, 16>}, {transform_indices = @transform_6, window_bounds = array<i64: 64, 2>}]} {
    %c0 = arith.constant 0 : index
    %c0_0 = arith.constant 0 : index
    %0 = vector.load %arg1[%c0, %c0_0] : memref<64x16xf32, #tpu.memory_space<vmem>>, vector<64x16xf32>
    %c0_1 = arith.constant 0 : index
    %c0_2 = arith.constant 0 : index
    %c0_3 = arith.constant 0 : index
    %1 = vector.load %arg2[%c0_1, %c0_2, %c0_3] : memref<8x128x128xf32, #tpu.memory_space<vmem>>, vector<1x16x128xf32>
    %2 = vector.shape_cast %1 : vector<1x16x128xf32> to vector<16x128xf32>
    %cst = arith.constant dense<0.000000e+00> : vector<64x128xf32>
    %3 = tpu.matmul %0, %2, %cst {dimension_numbers = #tpu.dot_dimension_numbers<[1], [0], [0], [1], [0, 0, 1, 1], [], []>} : vector<64x16xf32>, vector<16x128xf32>, vector<64x128xf32> -> vector<64x128xf32>
    %c0_4 = arith.constant 0 : index
    %c0_5 = arith.constant 0 : index
    %4 = vector.load %arg3[%c0_4, %c0_5] : memref<8x128xf32, #tpu.memory_space<vmem>>, vector<1x128xf32>
    %5 = vector.broadcast %4 : vector<1x128xf32> to vector<64x128xf32>
    %6 = arith.addf %3, %5 : vector<64x128xf32>
    %cst_6 = arith.constant dense<0.000000e+00> : vector<64xf32>
    %7 = vector.multi_reduction <add>, %6, %cst_6 [1] : vector<64x128xf32> to vector<64xf32>
    %8 = vector.shape_cast %7 : vector<64xf32> to vector<64x1xf32>
    %cst_7 = arith.constant 1.250000e-02 : f32
    %9 = vector.broadcast %cst_7 : f32 to vector<64x1xf32>
    %10 = arith.mulf %8, %9 : vector<64x1xf32>
    %11 = arith.mulf %6, %6 : vector<64x128xf32>
    %cst_8 = arith.constant dense<0.000000e+00> : vector<64xf32>
    %12 = vector.multi_reduction <add>, %11, %cst_8 [1] : vector<64x128xf32> to vector<64xf32>
    %13 = vector.shape_cast %12 : vector<64xf32> to vector<64x1xf32>
    %cst_9 = arith.constant 1.250000e-02 : f32
    %14 = vector.broadcast %cst_9 : f32 to vector<64x1xf32>
    %15 = arith.mulf %13, %14 : vector<64x1xf32>
    %16 = arith.mulf %10, %10 : vector<64x1xf32>
    %17 = arith.subf %15, %16 : vector<64x1xf32>
    %cst_10 = arith.constant 9.99999974E-6 : f32
    %18 = vector.broadcast %cst_10 : f32 to vector<64x1xf32>
    %19 = arith.addf %17, %18 : vector<64x1xf32>
    %20 = math.rsqrt %19 : vector<64x1xf32>
    %c0_11 = arith.constant 0 : index
    %c0_12 = arith.constant 0 : index
    %21 = vector.load %arg4[%c0_11, %c0_12] : memref<6x128xf32, #tpu.memory_space<vmem>>, vector<1x128xf32>
    %22 = vector.broadcast %20 : vector<64x1xf32> to vector<64x128xf32>
    %23 = vector.broadcast %21 : vector<1x128xf32> to vector<64x128xf32>
    %24 = arith.mulf %22, %23 : vector<64x128xf32>
    %25 = vector.broadcast %10 : vector<64x1xf32> to vector<64x128xf32>
    %26 = arith.subf %6, %25 : vector<64x128xf32>
    %27 = arith.mulf %26, %24 : vector<64x128xf32>
    %c0_13 = arith.constant 0 : index
    %c0_14 = arith.constant 0 : index
    %28 = vector.load %arg5[%c0_13, %c0_14] : memref<6x128xf32, #tpu.memory_space<vmem>>, vector<1x128xf32>
    %29 = vector.broadcast %28 : vector<1x128xf32> to vector<64x128xf32>
    %30 = arith.addf %27, %29 : vector<64x128xf32>
    %cst_15 = arith.constant 0.000000e+00 : f32
    %31 = vector.broadcast %cst_15 : f32 to vector<64x128xf32>
    %32 = arith.maximumf %30, %31 : vector<64x128xf32>
    %c1 = arith.constant 1 : index
    %c0_16 = arith.constant 0 : index
    %c0_17 = arith.constant 0 : index
    %33 = vector.load %arg2[%c1, %c0_16, %c0_17] : memref<8x128x128xf32, #tpu.memory_space<vmem>>, vector<1x128x128xf32>
    %34 = vector.shape_cast %33 : vector<1x128x128xf32> to vector<128x128xf32>
    %cst_18 = arith.constant dense<0.000000e+00> : vector<64x128xf32>
    %35 = tpu.matmul %32, %34, %cst_18 {dimension_numbers = #tpu.dot_dimension_numbers<[1], [0], [0], [1], [0, 0, 1, 1], [], []>} : vector<64x128xf32>, vector<128x128xf32>, vector<64x128xf32> -> vector<64x128xf32>
    %c1_19 = arith.constant 1 : index
    %c0_20 = arith.constant 0 : index
    %36 = vector.load %arg3[%c1_19, %c0_20] : memref<8x128xf32, #tpu.memory_space<vmem>>, vector<1x128xf32>
    %37 = vector.broadcast %36 : vector<1x128xf32> to vector<64x128xf32>
    %38 = arith.addf %35, %37 : vector<64x128xf32>
    %cst_21 = arith.constant dense<0.000000e+00> : vector<64xf32>
    %39 = vector.multi_reduction <add>, %38, %cst_21 [1] : vector<64x128xf32> to vector<64xf32>
    %40 = vector.shape_cast %39 : vector<64xf32> to vector<64x1xf32>
    %cst_22 = arith.constant 1.562500e-02 : f32
    %41 = vector.broadcast %cst_22 : f32 to vector<64x1xf32>
    %42 = arith.mulf %40, %41 : vector<64x1xf32>
    %43 = arith.mulf %38, %38 : vector<64x128xf32>
    %cst_23 = arith.constant dense<0.000000e+00> : vector<64xf32>
    %44 = vector.multi_reduction <add>, %43, %cst_23 [1] : vector<64x128xf32> to vector<64xf32>
    %45 = vector.shape_cast %44 : vector<64xf32> to vector<64x1xf32>
    %cst_24 = arith.constant 1.562500e-02 : f32
    %46 = vector.broadcast %cst_24 : f32 to vector<64x1xf32>
    %47 = arith.mulf %45, %46 : vector<64x1xf32>
    %48 = arith.mulf %42, %42 : vector<64x1xf32>
    %49 = arith.subf %47, %48 : vector<64x1xf32>
    %cst_25 = arith.constant 9.99999974E-6 : f32
    %50 = vector.broadcast %cst_25 : f32 to vector<64x1xf32>
    %51 = arith.addf %49, %50 : vector<64x1xf32>
    %52 = math.rsqrt %51 : vector<64x1xf32>
    %c1_26 = arith.constant 1 : index
    %c0_27 = arith.constant 0 : index
    %53 = vector.load %arg4[%c1_26, %c0_27] : memref<6x128xf32, #tpu.memory_space<vmem>>, vector<1x128xf32>
    %54 = vector.broadcast %52 : vector<64x1xf32> to vector<64x128xf32>
    %55 = vector.broadcast %53 : vector<1x128xf32> to vector<64x128xf32>
    %56 = arith.mulf %54, %55 : vector<64x128xf32>
    %57 = vector.broadcast %42 : vector<64x1xf32> to vector<64x128xf32>
    %58 = arith.subf %38, %57 : vector<64x128xf32>
    %59 = arith.mulf %58, %56 : vector<64x128xf32>
    %c1_28 = arith.constant 1 : index
    %c0_29 = arith.constant 0 : index
    %60 = vector.load %arg5[%c1_28, %c0_29] : memref<6x128xf32, #tpu.memory_space<vmem>>, vector<1x128xf32>
    %61 = vector.broadcast %60 : vector<1x128xf32> to vector<64x128xf32>
    %62 = arith.addf %59, %61 : vector<64x128xf32>
    %cst_30 = arith.constant 0.000000e+00 : f32
    %63 = vector.broadcast %cst_30 : f32 to vector<64x128xf32>
    %64 = arith.maximumf %62, %63 : vector<64x128xf32>
    %c2 = arith.constant 2 : index
    %c0_31 = arith.constant 0 : index
    %c0_32 = arith.constant 0 : index
    %65 = vector.load %arg2[%c2, %c0_31, %c0_32] : memref<8x128x128xf32, #tpu.memory_space<vmem>>, vector<1x128x128xf32>
    %66 = vector.shape_cast %65 : vector<1x128x128xf32> to vector<128x128xf32>
    %cst_33 = arith.constant dense<0.000000e+00> : vector<64x128xf32>
    %67 = tpu.matmul %64, %66, %cst_33 {dimension_numbers = #tpu.dot_dimension_numbers<[1], [0], [0], [1], [0, 0, 1, 1], [], []>} : vector<64x128xf32>, vector<128x128xf32>, vector<64x128xf32> -> vector<64x128xf32>
    %c2_34 = arith.constant 2 : index
    %c0_35 = arith.constant 0 : index
    %68 = vector.load %arg3[%c2_34, %c0_35] : memref<8x128xf32, #tpu.memory_space<vmem>>, vector<1x128xf32>
    %69 = vector.broadcast %68 : vector<1x128xf32> to vector<64x128xf32>
    %70 = arith.addf %67, %69 : vector<64x128xf32>
    %cst_36 = arith.constant dense<0.000000e+00> : vector<64xf32>
    %71 = vector.multi_reduction <add>, %70, %cst_36 [1] : vector<64x128xf32> to vector<64xf32>
    %72 = vector.shape_cast %71 : vector<64xf32> to vector<64x1xf32>
    %cst_37 = arith.constant 0.020833334 : f32
    %73 = vector.broadcast %cst_37 : f32 to vector<64x1xf32>
    %74 = arith.mulf %72, %73 : vector<64x1xf32>
    %75 = arith.mulf %70, %70 : vector<64x128xf32>
    %cst_38 = arith.constant dense<0.000000e+00> : vector<64xf32>
    %76 = vector.multi_reduction <add>, %75, %cst_38 [1] : vector<64x128xf32> to vector<64xf32>
    %77 = vector.shape_cast %76 : vector<64xf32> to vector<64x1xf32>
    %cst_39 = arith.constant 0.020833334 : f32
    %78 = vector.broadcast %cst_39 : f32 to vector<64x1xf32>
    %79 = arith.mulf %77, %78 : vector<64x1xf32>
    %80 = arith.mulf %74, %74 : vector<64x1xf32>
    %81 = arith.subf %79, %80 : vector<64x1xf32>
    %cst_40 = arith.constant 9.99999974E-6 : f32
    %82 = vector.broadcast %cst_40 : f32 to vector<64x1xf32>
    %83 = arith.addf %81, %82 : vector<64x1xf32>
    %84 = math.rsqrt %83 : vector<64x1xf32>
    %c2_41 = arith.constant 2 : index
    %c0_42 = arith.constant 0 : index
    %85 = vector.load %arg4[%c2_41, %c0_42] : memref<6x128xf32, #tpu.memory_space<vmem>>, vector<1x128xf32>
    %86 = vector.broadcast %84 : vector<64x1xf32> to vector<64x128xf32>
    %87 = vector.broadcast %85 : vector<1x128xf32> to vector<64x128xf32>
    %88 = arith.mulf %86, %87 : vector<64x128xf32>
    %89 = vector.broadcast %74 : vector<64x1xf32> to vector<64x128xf32>
    %90 = arith.subf %70, %89 : vector<64x128xf32>
    %91 = arith.mulf %90, %88 : vector<64x128xf32>
    %c2_43 = arith.constant 2 : index
    %c0_44 = arith.constant 0 : index
    %92 = vector.load %arg5[%c2_43, %c0_44] : memref<6x128xf32, #tpu.memory_space<vmem>>, vector<1x128xf32>
    %93 = vector.broadcast %92 : vector<1x128xf32> to vector<64x128xf32>
    %94 = arith.addf %91, %93 : vector<64x128xf32>
    %cst_45 = arith.constant 0.000000e+00 : f32
    %95 = vector.broadcast %cst_45 : f32 to vector<64x128xf32>
    %96 = arith.maximumf %94, %95 : vector<64x128xf32>
    %c3 = arith.constant 3 : index
    %c0_46 = arith.constant 0 : index
    %c0_47 = arith.constant 0 : index
    %97 = vector.load %arg2[%c3, %c0_46, %c0_47] : memref<8x128x128xf32, #tpu.memory_space<vmem>>, vector<1x128x128xf32>
    %98 = vector.shape_cast %97 : vector<1x128x128xf32> to vector<128x128xf32>
    %cst_48 = arith.constant dense<0.000000e+00> : vector<64x128xf32>
    %99 = tpu.matmul %96, %98, %cst_48 {dimension_numbers = #tpu.dot_dimension_numbers<[1], [0], [0], [1], [0, 0, 1, 1], [], []>} : vector<64x128xf32>, vector<128x128xf32>, vector<64x128xf32> -> vector<64x128xf32>
    %c3_49 = arith.constant 3 : index
    %c0_50 = arith.constant 0 : index
    %100 = vector.load %arg3[%c3_49, %c0_50] : memref<8x128xf32, #tpu.memory_space<vmem>>, vector<1x128xf32>
    %101 = vector.broadcast %100 : vector<1x128xf32> to vector<64x128xf32>
    %102 = arith.addf %99, %101 : vector<64x128xf32>
    %103 = vector.extract_strided_slice %102 {offsets = [0, 0], sizes = [64, 2], strides = [1, 1]} : vector<64x128xf32> to vector<64x2xf32>
    %c0_51 = arith.constant 0 : index
    %c0_52 = arith.constant 0 : index
    %104 = vector.load %arg7[%c0_51, %c0_52] : memref<64x2xf32, #tpu.memory_space<vmem>>, vector<64x2xf32>
    tpu.vector_store %arg7[%c0_51, %c0_52], %103 {strides = array<i32>} : memref<64x2xf32, #tpu.memory_space<vmem>>, vector<64x2xf32>,
    %105 = vector.extract_strided_slice %102 {offsets = [0, 0], sizes = [64, 1], strides = [1, 1]} : vector<64x128xf32> to vector<64x1xf32>
    %c4 = arith.constant 4 : index
    %c0_53 = arith.constant 0 : index
    %c0_54 = arith.constant 0 : index
    %106 = vector.load %arg2[%c4, %c0_53, %c0_54] : memref<8x128x128xf32, #tpu.memory_space<vmem>>, vector<1x1x128xf32>
    %107 = vector.shape_cast %106 : vector<1x1x128xf32> to vector<1x128xf32>
    %108 = vector.broadcast %105 : vector<64x1xf32> to vector<64x128xf32>
    %109 = vector.broadcast %107 : vector<1x128xf32> to vector<64x128xf32>
    %110 = arith.mulf %108, %109 : vector<64x128xf32>
    %111 = vector.extract_strided_slice %102 {offsets = [0, 1], sizes = [64, 1], strides = [1, 1]} : vector<64x128xf32> to vector<64x1xf32>
    %c4_55 = arith.constant 4 : index
    %c1_56 = arith.constant 1 : index
    %c0_57 = arith.constant 0 : index
    %112 = vector.load %arg2[%c4_55, %c1_56, %c0_57] : memref<8x128x128xf32, #tpu.memory_space<vmem>>, vector<1x1x128xf32>
    %113 = vector.shape_cast %112 : vector<1x1x128xf32> to vector<1x128xf32>
    %114 = vector.broadcast %111 : vector<64x1xf32> to vector<64x128xf32>
    %115 = vector.broadcast %113 : vector<1x128xf32> to vector<64x128xf32>
    %116 = arith.mulf %114, %115 : vector<64x128xf32>
    %117 = arith.addf %110, %116 : vector<64x128xf32>
    %c4_58 = arith.constant 4 : index
    %c0_59 = arith.constant 0 : index
    %118 = vector.load %arg3[%c4_58, %c0_59] : memref<8x128xf32, #tpu.memory_space<vmem>>, vector<1x128xf32>
    %119 = vector.broadcast %118 : vector<1x128xf32> to vector<64x128xf32>
    %120 = arith.addf %117, %119 : vector<64x128xf32>
    %cst_60 = arith.constant dense<0.000000e+00> : vector<64xf32>
    %121 = vector.multi_reduction <add>, %120, %cst_60 [1] : vector<64x128xf32> to vector<64xf32>
    %122 = vector.shape_cast %121 : vector<64xf32> to vector<64x1xf32>
    %cst_61 = arith.constant 0.020833334 : f32
    %123 = vector.broadcast %cst_61 : f32 to vector<64x1xf32>
    %124 = arith.mulf %122, %123 : vector<64x1xf32>
    %125 = arith.mulf %120, %120 : vector<64x128xf32>
    %cst_62 = arith.constant dense<0.000000e+00> : vector<64xf32>
    %126 = vector.multi_reduction <add>, %125, %cst_62 [1] : vector<64x128xf32> to vector<64xf32>
    %127 = vector.shape_cast %126 : vector<64xf32> to vector<64x1xf32>
    %cst_63 = arith.constant 0.020833334 : f32
    %128 = vector.broadcast %cst_63 : f32 to vector<64x1xf32>
    %129 = arith.mulf %127, %128 : vector<64x1xf32>
    %130 = arith.mulf %124, %124 : vector<64x1xf32>
    %131 = arith.subf %129, %130 : vector<64x1xf32>
    %cst_64 = arith.constant 9.99999974E-6 : f32
    %132 = vector.broadcast %cst_64 : f32 to vector<64x1xf32>
    %133 = arith.addf %131, %132 : vector<64x1xf32>
    %134 = math.rsqrt %133 : vector<64x1xf32>
    %c3_65 = arith.constant 3 : index
    %c0_66 = arith.constant 0 : index
    %135 = vector.load %arg4[%c3_65, %c0_66] : memref<6x128xf32, #tpu.memory_space<vmem>>, vector<1x128xf32>
    %136 = vector.broadcast %134 : vector<64x1xf32> to vector<64x128xf32>
    %137 = vector.broadcast %135 : vector<1x128xf32> to vector<64x128xf32>
    %138 = arith.mulf %136, %137 : vector<64x128xf32>
    %139 = vector.broadcast %124 : vector<64x1xf32> to vector<64x128xf32>
    %140 = arith.subf %120, %139 : vector<64x128xf32>
    %141 = arith.mulf %140, %138 : vector<64x128xf32>
    %c3_67 = arith.constant 3 : index
    %c0_68 = arith.constant 0 : index
    %142 = vector.load %arg5[%c3_67, %c0_68] : memref<6x128xf32, #tpu.memory_space<vmem>>, vector<1x128xf32>
    %143 = vector.broadcast %142 : vector<1x128xf32> to vector<64x128xf32>
    %144 = arith.addf %141, %143 : vector<64x128xf32>
    %cst_69 = arith.constant 0.000000e+00 : f32
    %145 = vector.broadcast %cst_69 : f32 to vector<64x128xf32>
    %146 = arith.maximumf %144, %145 : vector<64x128xf32>
    %c5 = arith.constant 5 : index
    %c0_70 = arith.constant 0 : index
    %c0_71 = arith.constant 0 : index
    %147 = vector.load %arg2[%c5, %c0_70, %c0_71] : memref<8x128x128xf32, #tpu.memory_space<vmem>>, vector<1x128x128xf32>
    %148 = vector.shape_cast %147 : vector<1x128x128xf32> to vector<128x128xf32>
    %cst_72 = arith.constant dense<0.000000e+00> : vector<64x128xf32>
    %149 = tpu.matmul %146, %148, %cst_72 {dimension_numbers = #tpu.dot_dimension_numbers<[1], [0], [0], [1], [0, 0, 1, 1], [], []>} : vector<64x128xf32>, vector<128x128xf32>, vector<64x128xf32> -> vector<64x128xf32>
    %c5_73 = arith.constant 5 : index
    %c0_74 = arith.constant 0 : index
    %150 = vector.load %arg3[%c5_73, %c0_74] : memref<8x128xf32, #tpu.memory_space<vmem>>, vector<1x128xf32>
    %151 = vector.broadcast %150 : vector<1x128xf32> to vector<64x128xf32>
    %152 = arith.addf %149, %151 : vector<64x128xf32>
    %cst_75 = arith.constant dense<0.000000e+00> : vector<64xf32>
    %153 = vector.multi_reduction <add>, %152, %cst_75 [1] : vector<64x128xf32> to vector<64xf32>
    %154 = vector.shape_cast %153 : vector<64xf32> to vector<64x1xf32>
    %cst_76 = arith.constant 1.562500e-02 : f32
    %155 = vector.broadcast %cst_76 : f32 to vector<64x1xf32>
    %156 = arith.mulf %154, %155 : vector<64x1xf32>
    %157 = arith.mulf %152, %152 : vector<64x128xf32>
    %cst_77 = arith.constant dense<0.000000e+00> : vector<64xf32>
    %158 = vector.multi_reduction <add>, %157, %cst_77 [1] : vector<64x128xf32> to vector<64xf32>
    %159 = vector.shape_cast %158 : vector<64xf32> to vector<64x1xf32>
    %cst_78 = arith.constant 1.562500e-02 : f32
    %160 = vector.broadcast %cst_78 : f32 to vector<64x1xf32>
    %161 = arith.mulf %159, %160 : vector<64x1xf32>
    %162 = arith.mulf %156, %156 : vector<64x1xf32>
    %163 = arith.subf %161, %162 : vector<64x1xf32>
    %cst_79 = arith.constant 9.99999974E-6 : f32
    %164 = vector.broadcast %cst_79 : f32 to vector<64x1xf32>
    %165 = arith.addf %163, %164 : vector<64x1xf32>
    %166 = math.rsqrt %165 : vector<64x1xf32>
    %c4_80 = arith.constant 4 : index
    %c0_81 = arith.constant 0 : index
    %167 = vector.load %arg4[%c4_80, %c0_81] : memref<6x128xf32, #tpu.memory_space<vmem>>, vector<1x128xf32>
    %168 = vector.broadcast %166 : vector<64x1xf32> to vector<64x128xf32>
    %169 = vector.broadcast %167 : vector<1x128xf32> to vector<64x128xf32>
    %170 = arith.mulf %168, %169 : vector<64x128xf32>
    %171 = vector.broadcast %156 : vector<64x1xf32> to vector<64x128xf32>
    %172 = arith.subf %152, %171 : vector<64x128xf32>
    %173 = arith.mulf %172, %170 : vector<64x128xf32>
    %c4_82 = arith.constant 4 : index
    %c0_83 = arith.constant 0 : index
    %174 = vector.load %arg5[%c4_82, %c0_83] : memref<6x128xf32, #tpu.memory_space<vmem>>, vector<1x128xf32>
    %175 = vector.broadcast %174 : vector<1x128xf32> to vector<64x128xf32>
    %176 = arith.addf %173, %175 : vector<64x128xf32>
    %cst_84 = arith.constant 0.000000e+00 : f32
    %177 = vector.broadcast %cst_84 : f32 to vector<64x128xf32>
    %178 = arith.maximumf %176, %177 : vector<64x128xf32>
    %c6 = arith.constant 6 : index
    %c0_85 = arith.constant 0 : index
    %c0_86 = arith.constant 0 : index
    %179 = vector.load %arg2[%c6, %c0_85, %c0_86] : memref<8x128x128xf32, #tpu.memory_space<vmem>>, vector<1x128x128xf32>
    %180 = vector.shape_cast %179 : vector<1x128x128xf32> to vector<128x128xf32>
    %cst_87 = arith.constant dense<0.000000e+00> : vector<64x128xf32>
    %181 = tpu.matmul %178, %180, %cst_87 {dimension_numbers = #tpu.dot_dimension_numbers<[1], [0], [0], [1], [0, 0, 1, 1], [], []>} : vector<64x128xf32>, vector<128x128xf32>, vector<64x128xf32> -> vector<64x128xf32>
    %c6_88 = arith.constant 6 : index
    %c0_89 = arith.constant 0 : index
    %182 = vector.load %arg3[%c6_88, %c0_89] : memref<8x128xf32, #tpu.memory_space<vmem>>, vector<1x128xf32>
    %183 = vector.broadcast %182 : vector<1x128xf32> to vector<64x128xf32>
    %184 = arith.addf %181, %183 : vector<64x128xf32>
    %cst_90 = arith.constant dense<0.000000e+00> : vector<64xf32>
    %185 = vector.multi_reduction <add>, %184, %cst_90 [1] : vector<64x128xf32> to vector<64xf32>
    %186 = vector.shape_cast %185 : vector<64xf32> to vector<64x1xf32>
    %cst_91 = arith.constant 1.250000e-02 : f32
    %187 = vector.broadcast %cst_91 : f32 to vector<64x1xf32>
    %188 = arith.mulf %186, %187 : vector<64x1xf32>
    %189 = arith.mulf %184, %184 : vector<64x128xf32>
    %cst_92 = arith.constant dense<0.000000e+00> : vector<64xf32>
    %190 = vector.multi_reduction <add>, %189, %cst_92 [1] : vector<64x128xf32> to vector<64xf32>
    %191 = vector.shape_cast %190 : vector<64xf32> to vector<64x1xf32>
    %cst_93 = arith.constant 1.250000e-02 : f32
    %192 = vector.broadcast %cst_93 : f32 to vector<64x1xf32>
    %193 = arith.mulf %191, %192 : vector<64x1xf32>
    %194 = arith.mulf %188, %188 : vector<64x1xf32>
    %195 = arith.subf %193, %194 : vector<64x1xf32>
    %cst_94 = arith.constant 9.99999974E-6 : f32
    %196 = vector.broadcast %cst_94 : f32 to vector<64x1xf32>
    %197 = arith.addf %195, %196 : vector<64x1xf32>
    %198 = math.rsqrt %197 : vector<64x1xf32>
    %c5_95 = arith.constant 5 : index
    %c0_96 = arith.constant 0 : index
    %199 = vector.load %arg4[%c5_95, %c0_96] : memref<6x128xf32, #tpu.memory_space<vmem>>, vector<1x128xf32>
    %200 = vector.broadcast %198 : vector<64x1xf32> to vector<64x128xf32>
    %201 = vector.broadcast %199 : vector<1x128xf32> to vector<64x128xf32>
    %202 = arith.mulf %200, %201 : vector<64x128xf32>
    %203 = vector.broadcast %188 : vector<64x1xf32> to vector<64x128xf32>
    %204 = arith.subf %184, %203 : vector<64x128xf32>
    %205 = arith.mulf %204, %202 : vector<64x128xf32>
    %c5_97 = arith.constant 5 : index
    %c0_98 = arith.constant 0 : index
    %206 = vector.load %arg5[%c5_97, %c0_98] : memref<6x128xf32, #tpu.memory_space<vmem>>, vector<1x128xf32>
    %207 = vector.broadcast %206 : vector<1x128xf32> to vector<64x128xf32>
    %208 = arith.addf %205, %207 : vector<64x128xf32>
    %cst_99 = arith.constant 0.000000e+00 : f32
    %209 = vector.broadcast %cst_99 : f32 to vector<64x128xf32>
    %210 = arith.maximumf %208, %209 : vector<64x128xf32>
    %c7 = arith.constant 7 : index
    %c0_100 = arith.constant 0 : index
    %c0_101 = arith.constant 0 : index
    %211 = vector.load %arg2[%c7, %c0_100, %c0_101] : memref<8x128x128xf32, #tpu.memory_space<vmem>>, vector<1x128x128xf32>
    %212 = vector.shape_cast %211 : vector<1x128x128xf32> to vector<128x128xf32>
    %cst_102 = arith.constant dense<0.000000e+00> : vector<64x128xf32>
    %213 = tpu.matmul %210, %212, %cst_102 {dimension_numbers = #tpu.dot_dimension_numbers<[1], [0], [0], [1], [0, 0, 1, 1], [], []>} : vector<64x128xf32>, vector<128x128xf32>, vector<64x128xf32> -> vector<64x128xf32>
    %c7_103 = arith.constant 7 : index
    %c0_104 = arith.constant 0 : index
    %214 = vector.load %arg3[%c7_103, %c0_104] : memref<8x128xf32, #tpu.memory_space<vmem>>, vector<1x128xf32>
    %215 = vector.broadcast %214 : vector<1x128xf32> to vector<64x128xf32>
    %216 = arith.addf %213, %215 : vector<64x128xf32>
    %217 = tpu.iota {dimensions = array<i32: 1>} : vector<64x128xi32>
    %c16_i32 = arith.constant 16 : i32
    %218 = vector.broadcast %c16_i32 : i32 to vector<64x128xi32>
    %219 = arith.cmpi slt, %217, %218 : vector<64x128xi32>
    %cst_105 = arith.constant -1.000000e+30 : f32
    %220 = vector.broadcast %cst_105 : f32 to vector<64x128xf32>
    %221 = arith.select %219, %216, %220 : vector<64x128xi1>, vector<64x128xf32>
    %cst_106 = arith.constant dense<0xFF800000> : vector<64xf32>
    %222 = vector.multi_reduction <maximumf>, %221, %cst_106 [1] : vector<64x128xf32> to vector<64xf32>
    %223 = vector.shape_cast %222 : vector<64xf32> to vector<64x1xf32>
    %224 = vector.broadcast %223 : vector<64x1xf32> to vector<64x128xf32>
    %225 = arith.subf %221, %224 : vector<64x128xf32>
    %226 = math.exp %225 : vector<64x128xf32>
    %cst_107 = arith.constant dense<0.000000e+00> : vector<64xf32>
    %227 = vector.multi_reduction <add>, %226, %cst_107 [1] : vector<64x128xf32> to vector<64xf32>
    %228 = vector.shape_cast %227 : vector<64xf32> to vector<64x1xf32>
    %229 = tpu.reciprocal %228 {approx = true} : vector<64x1xf32> -> vector<64x1xf32>
    %230 = arith.mulf %228, %229 : vector<64x1xf32>
    %cst_108 = arith.constant 2.000000e+00 : f32
    %231 = vector.broadcast %cst_108 : f32 to vector<64x1xf32>
    %232 = arith.subf %231, %230 : vector<64x1xf32>
    %233 = arith.mulf %229, %232 : vector<64x1xf32>
    %234 = vector.broadcast %233 : vector<64x1xf32> to vector<64x128xf32>
    %235 = arith.mulf %226, %234 : vector<64x128xf32>
    %236 = vector.extract_strided_slice %235 {offsets = [0, 0], sizes = [64, 16], strides = [1, 1]} : vector<64x128xf32> to vector<64x16xf32>
    %c0_109 = arith.constant 0 : index
    %c0_110 = arith.constant 0 : index
    %237 = vector.load %arg6[%c0_109, %c0_110] : memref<64x16xf32, #tpu.memory_space<vmem>>, vector<64x16xf32>
    tpu.vector_store %arg6[%c0_109, %c0_110], %236 {strides = array<i32>} : memref<64x16xf32, #tpu.memory_space<vmem>>, vector<64x16xf32>,
    return
  }
  func.func @transform_0(%arg0: i32) -> (i32, i32) {
    %c0_i32 = arith.constant 0 : i32
    %c0_i32_0 = arith.constant 0 : i32
    return %arg0, %c0_i32 : i32, i32
  }
  func.func @transform_1(%arg0: i32) -> (i32, i32, i32) {
    %c0_i32 = arith.constant 0 : i32
    %c0_i32_0 = arith.constant 0 : i32
    %c0_i32_1 = arith.constant 0 : i32
    %c0_i32_2 = arith.constant 0 : i32
    return %c0_i32, %c0_i32_0, %c0_i32_1 : i32, i32, i32
  }
  func.func @transform_2(%arg0: i32) -> (i32, i32) {
    %c0_i32 = arith.constant 0 : i32
    %c0_i32_0 = arith.constant 0 : i32
    %c0_i32_1 = arith.constant 0 : i32
    return %c0_i32, %c0_i32_0 : i32, i32
  }
  func.func @transform_3(%arg0: i32) -> (i32, i32) {
    %c0_i32 = arith.constant 0 : i32
    %c0_i32_0 = arith.constant 0 : i32
    %c0_i32_1 = arith.constant 0 : i32
    return %c0_i32, %c0_i32_0 : i32, i32
  }
  func.func @transform_4(%arg0: i32) -> (i32, i32) {
    %c0_i32 = arith.constant 0 : i32
    %c0_i32_0 = arith.constant 0 : i32
    %c0_i32_1 = arith.constant 0 : i32
    return %c0_i32, %c0_i32_0 : i32, i32
  }
  func.func @transform_5(%arg0: i32) -> (i32, i32) {
    %c0_i32 = arith.constant 0 : i32
    %c0_i32_0 = arith.constant 0 : i32
    return %arg0, %c0_i32 : i32, i32
  }
  func.func @transform_6(%arg0: i32) -> (i32, i32) {
    %c0_i32 = arith.constant 0 : i32
    %c0_i32_0 = arith.constant 0 : i32
    return %arg0, %c0_i32 : i32, i32
  }
}

</mosaic_0001>

<bundles_post_ra>
// kernel: tpu_custom_call.1
= control target key start
LH: loop header
LB: loop body
LE: loop exit
PB: predicated region body
PF: predicated region fallthrough
CT: control target
= control target key end

     0   :  { %12 = vsyncpa [#allocation3], 0  ;;  %s3286_s21 = smov 0   ;;  %s3991_s0 = inlined_call_operand.vmem [shape: f32[256,16], index: 0, kind: input, shape index: {}]   ;;  %s3992_s1 = inlined_call_operand.hbm [shape: f32[8,128,128], index: 1, kind: input, shape index: {}]   ;;  %s3993_s2 = inlined_call_operand.vmem [shape: f32[8,128], index: 2, kind: input, shape index: {}]   ;;  %s3994_s3 = inlined_call_operand.vmem [shape: f32[6,128], index: 3, kind: input, shape index: {}]   ;;  %s3995_s4 = inlined_call_operand.vmem [shape: f32[6,128], index: 4, kind: input, shape index: {}]   ;;  %s3996_s5 = inlined_call_operand.vmem [shape: f32[256,16], index: 5, kind: output, shape index: {0}]   ;;  %s3997_s6 = inlined_call_operand.vmem [shape: f32[256,2], index: 6, kind: output, shape index: {1}]  }
   0x1 LB: > { %s2365_s22 = sadd.s32 4294967295, %s3244_s21   ;;  %p2367_p0 = scmp.ge.s32.totalorder %s3244_s21, 1  ;;  %s3244_s21 = sphi %s3286_s21, %s18_s21  }
   0x2   : > { %p185_p1 = scmp.lt.s32.totalorder %s3244_s21, 5  ;;  %s3246_s23 = smov [#allocation2]  }
   0x3   : > { %s197_s24 = sshll.u32 %s3246_s23, 4  ;;  %p3300_p3 = scmp.eq.s32.totalorder %s2365_s22, 0  ;;  %s198_s24 = int_to_ptr.vmem [resolvable:$true] %s197_s24 }
   0x4   : > { %p3294_p2 = pnand %p2367_p0, %p185_p1  ;;  %s3206_s30 = scalar_lea.hbm %s3992_s1, 16384 }
   0x5   : > { %s4002_s26 = scalar_select %p3300_p3, 1, 0 }
   0x6   : > { %s4001_s25 = scalar_select %p3294_p2, 1, 0 }
   0x7   : > { %p3044_p4 = pneg %p3294_p2  ;;  %p3207_p6 = scmp.ne.s32.totalorder %s3992_s1, %s3206_s30 }
   0x8   : > { %p3213_p10 = scmp.lt.u32.totalorder %s3206_s30, %s3992_s1 }
   0x9   : > { %p3308_p5 = pnand %p3300_p3, %p3044_p4 }
   0xb   : > { %p3208_p7 = pneg %p3308_p5 }
   0xd   : > { %p3209_p8 = pnand %p3208_p7, %p3207_p6 }
   0xf   : > { %p3210_p9 = pneg %p3209_p8 }
  0x11   : > { %p3215_p11 = pnand %p3213_p10, %p3210_p9 }
  0x13   : > { %3218 = shalt.err (!%p3215_p11)
}
  0x14   : > { %s3219_s11 = scalar_lea.vmem %s198_s24, 16384  ;;  %p3227_p1 = scmp.lt.s32.totalorder %s198_s24, %s198_s24 }
  0x15   : > { %p3220_p12 = scmp.ne.s32.totalorder %s198_s24, %s3219_s11  ;;  %p3228_p4 = scmp.lt.s32.totalorder %s3219_s11, %s3219_s11 }
  0x17   : > { %p3222_p13 = pnand %p3220_p12, %p3208_p7  ;;  %p3229_p3 = por %p3228_p4, %p3227_p1 }
  0x19   : > { %p3223_p0 = pneg %p3222_p13 }
  0x1b   : > { %p3230_p2 = pnand %p3229_p3, %p3223_p0 }
  0x1d   : > { %3233 = shalt.err (!%p3230_p2)
}
  0x1e   : > { %s3247_s12 = smov 128   ;;  %s3248_s13 = smov 8  }
  0x1f   : > { %3047 = dma.hbm_to_vmem [thread:$0]  (!%p3308_p5), %s3992_s1, 16384, %s198_s24, [#allocation3], %s3247_s12, %s3247_s12, %s3248_s13  }
  0x20   : > { %p4004_p6 = scmp.ne.s32.totalorder %s4001_s25, 0 }
  0x21   : > { %p4005_p8 = scmp.ne.s32.totalorder (!%p4004_p6), %s4002_s26, 0 }
  0x22   : > { %231 = sbr.rel (%p4004_p6) target bundleno = 3094 (0xc16), region = 40 }
  0x29   : > { %3239 = dma.done.wait (%p4005_p8), [#allocation3], 16384  }
  0x2a   : > { %3241 = vsyncadd (%p4005_p8), [#allocation3], 4294950912  ;;  %s2372_s16 = sshll.u32 %s2365_s22, 3  ;;  %vm299_vm0 = vcmask 130048   ;;  %v292_v0 = vld [vmem:[#allocation2] sm:$0xff]  ;;  %v293_v1 = vld [vmem:[#allocation2 + $0x8] sm:$0xff] }
  0x2b   : > { %p267_p2 = scmp.lt.s32.totalorder %s2372_s16, 31  ;;  %v2844_v3 = vpack.c.bf16 %v293_v1, %v292_v0  ;;  %v2378_v11 = vld [vmem:[%s3993_s2] ss:$0 sm:$0xff]  ;;  %v569_v29 = vld [vmem:[#allocation2 + $0x88] sm:$0xff]  ;;  %v570_v33 = vld [vmem:[#allocation2 + $0x90] sm:$0xff]  ;;  %vm1224_vm1 = vcmask 15360  }
  0x2c   : > { %v568_v28 = vld [vmem:[#allocation2 + $0x80] sm:$0xff]  ;;  %v571_v34 = vld [vmem:[#allocation2 + $0x98] sm:$0xff]  ;;  %v573_v39 = vld [vmem:[#allocation2 + $0xa8] sm:$0xff] }
  0x2d   : > { %s4007_s16 = smov (!%p267_p2, %s2372_s16), 31  ;;  %2845 = vmatprep.subr.bf16.mxu0 %v2844_v3  ;;  %v2848_v31 = vpack.c.bf16 %v569_v29, %v568_v28  ;;  %v2852_v36 = vpack.c.bf16 %v571_v34, %v570_v33  ;;  %v572_v38 = vld [vmem:[#allocation2 + $0xa0] sm:$0xff]  ;;  %v574_v43 = vld [vmem:[#allocation2 + $0xb0] sm:$0xff]  ;;  %v575_v44 = vld [vmem:[#allocation2 + $0xb8] sm:$0xff] }
  0x2e   : > { %s3336_s17 = sshll.u32 %s4007_s16, 3  ;;  %2847 = vmatpush3.bf16.msra.mxu0 %v2844_v3  ;;  %v2856_v41 = vpack.c.bf16 %v573_v39, %v572_v38  ;;  %v2860_v46 = vpack.c.bf16 %v575_v44, %v574_v43  ;;  %v576_v48 = vld [vmem:[#allocation2 + $0xc0] sm:$0xff]  ;;  %v577_v49 = vld [vmem:[#allocation2 + $0xc8] sm:$0xff]  ;;  %v578_v51 = vld [vmem:[#allocation2 + $0xd0] sm:$0xff] }
  0x2f   : > { %s270_s20 = scalar_lea.vmem %s3991_s0, %s3336_s17  ;;  %2849 = vmatprep.subr.bf16.mxu1 %v2848_v31  ;;  %v2864_v50 = vpack.c.bf16 %v577_v49, %v576_v48  ;;  %v579_v52 = vld [vmem:[#allocation2 + $0xd8] sm:$0xff]  ;;  %v580_v54 = vld [vmem:[#allocation2 + $0xe0] sm:$0xff]  ;;  %v581_v55 = vld [vmem:[#allocation2 + $0xe8] sm:$0xff]  ;;  %s3648_s22 = scalar_lea.vmem %s3997_s6, %s3336_s17 }
  0x30   : > { %v284_v2 = vld [vmem:[%s270_s20] sm:$0xff]  ;;  %v285_v4 = vld [vmem:[%s270_s20 + $0x8] sm:$0xff]  ;;  %v286_v5 = vld [vmem:[%s270_s20 + $0x10] sm:$0xff]  ;;  %2851 = vmatpush3.bf16.msra.mxu1 %v2848_v31  ;;  %v2868_v53 = vpack.c.bf16 %v579_v52, %v578_v51  ;;  %v2872_v56 = vpack.c.bf16 %v581_v55, %v580_v54  ;;  %s3968_s23 = scalar_lea.vmem %s3996_s5, %s3336_s17 }
  0x31   : > { %2568 = vmatprep.mubr.msk.f32.mxu0 %vm299_vm0, %v284_v2  ;;  %v287_v6 = vld [vmem:[%s270_s20 + $0x18] sm:$0xff]  ;;  %v288_v7 = vld [vmem:[%s270_s20 + $0x20] sm:$0xff]  ;;  %v289_v8 = vld [vmem:[%s270_s20 + $0x28] sm:$0xff]  ;;  %2853 = vmatprep.subr.bf16.mxu1 %v2852_v36 }
  0x32   : > { %2569 = vmatmul.mubr.msk.f32.vlgmr.msra.gmra.mrb[0].mxu0 %vm299_vm0, %v285_v4  ;;  %v290_v9 = vld [vmem:[%s270_s20 + $0x30] sm:$0xff]  ;;  %v291_v10 = vld [vmem:[%s270_s20 + $0x38] sm:$0xff]  ;;  %v3406_v29 = vld [vmem:[%s3994_s3] ss:$0 sm:$0xff] }
  0x33   : > { %2571 = vmatprep.mubr.msk.f32.mxu0 %vm299_vm0, %v286_v5  ;;  %v582_v57 = vld [vmem:[#allocation2 + $0xf0] sm:$0xff]  ;;  %v583_v58 = vld [vmem:[#allocation2 + $0xf8] sm:$0xff]  ;;  %v3421_v52 = vld [vmem:[%s3995_s4] ss:$0 sm:$0xff] }
  0x34   : > { %2855 = vmatpush3.bf16.msra.mxu1 %v2852_v36  ;;  %v2876_v59 = vpack.c.bf16 %v583_v58, %v582_v57 }
  0x35   : > { %2857 = vmatprep.subr.bf16.mxu1 %v2856_v41 }
  0x36   : > { %2572 = vmatmul.mubr.msk.f32.gmra.mrb[2].mxu0 %vm299_vm0, %v287_v6 }
  0x37   : > { %2574 = vmatprep.mubr.msk.f32.mxu0 %vm299_vm0, %v288_v7 }
  0x38   : > { %2859 = vmatpush3.bf16.msra.mxu1 %v2856_v41 }
  0x39   : > { %2861 = vmatprep.subr.bf16.mxu1 %v2860_v46 }
  0x3a   : > { %2575 = vmatmul.mubr.msk.f32.gmra.mrb[4].mxu0 %vm299_vm0, %v289_v8 }
  0x3b   : > { %2577 = vmatprep.mubr.msk.f32.mxu0 %vm299_vm0, %v290_v9 }
  0x3c   : > { %2863 = vmatpush3.bf16.msra.mxu1 %v2860_v46 }
  0x3d   : > { %2865 = vmatprep.subr.bf16.mxu1 %v2864_v50 }
  0x3e   : > { %2578 = vmatmul.mubr.msk.f32.gmra.mrb[6].mxu0 %vm299_vm0, %v291_v10 }
  0x40   : > { %2867 = vmatpush3.bf16.msra.mxu1 %v2864_v50 }
  0x41   : > { %2869 = vmatprep.subr.bf16.mxu1 %v2868_v53 }
  0x44   : > { %2871 = vmatpush3.bf16.msra.mxu1 %v2868_v53 }
  0x45   : > { %2873 = vmatprep.subr.bf16.mxu1 %v2872_v56 }
  0x48   : > { %2875 = vmatpush3.bf16.msra.mxu1 %v2872_v56 }
  0x49   : > { %2877 = vmatprep.subr.bf16.mxu1 %v2876_v59 }
  0x4c   : > { %2879 = vmatpush3.bf16.msra.mxu1 %v2876_v59 }
 0x105   : > { %v2570_v12 = vpop.f32.mrb[0].mxu0 }
 0x106   : > { %v3353_v13 = vadd.f32 %v2570_v12, %v2378_v11  ;;  %v390_v14 = vpop.f32.mrb[1].mxu0 }
 0x107   : > { %v3355_v15 = vadd.f32 %v2378_v11, %v390_v14 }
 0x108   : > { %431 = vadd.xlane.f32.xlu0 %v3353_v13  ;;  %v454_v16 = vmul.f32 %v3353_v13, %v3353_v13 }
 0x109   : > { %v2573_v17 = vpop.f32.mrb[2].mxu0  ;;  %v453_v20 = vmul.f32 %v3355_v15, %v3355_v15 }
 0x10a   : > { %463 = vadd.xlane.f32.xlu1 %v454_v16  ;;  %v400_v18 = vpop.f32.mrb[3].mxu0  ;;  %v3365_v22 = vadd.f32 %v2573_v17, %v2378_v11 }
 0x10b   : > { %v3361_v19 = vadd.f32 %v2378_v11, %v400_v18 }
 0x10c   : > { %429 = vadd.xlane.f32.xlu0 %v3355_v15  ;;  %v456_v26 = vmul.f32 %v3365_v22, %v3365_v22 }
 0x10d   : > { %v2576_v21 = vpop.f32.mrb[4].mxu0  ;;  %v455_v24 = vmul.f32 %v3361_v19, %v3361_v19 }
 0x10e   : > { %461 = vadd.xlane.f32.xlu1 %v453_v20  ;;  %v410_v23 = vpop.f32.mrb[5].mxu0  ;;  %v3375_v32 = vadd.f32 %v2576_v21, %v2378_v11 }
 0x10f   : > { %v3373_v30 = vadd.f32 %v2378_v11, %v410_v23 }
 0x110   : > { %433 = vadd.xlane.f32.xlu0 %v3361_v19  ;;  %v458_v37 = vmul.f32 %v3375_v32, %v3375_v32 }
 0x111   : > { %v2579_v25 = vpop.f32.mrb[6].mxu0  ;;  %v457_v35 = vmul.f32 %v3373_v30, %v3373_v30 }
 0x112   : > { %435 = vadd.xlane.f32.xlu1 %v3365_v22  ;;  %v420_v27 = vpop.f32.mrb[7].mxu0  ;;  %v3385_v42 = vadd.f32 %v2579_v25, %v2378_v11 }
 0x113   : > { %v3383_v40 = vadd.f32 %v2378_v11, %v420_v27 }
 0x114   : > { %465 = vadd.xlane.f32.xlu0 %v455_v24  ;;  %v460_v47 = vmul.f32 %v3385_v42, %v3385_v42 }
 0x115   : > { %v459_v45 = vmul.f32 %v3383_v40, %v3383_v40 }
 0x116   : > { %467 = vadd.xlane.f32.xlu1 %v456_v26 }
 0x118   : > { %437 = vadd.xlane.f32.xlu0 %v3373_v30 }
 0x11a   : > { %439 = vadd.xlane.f32.xlu1 %v3375_v32 }
 0x11c   : > { %469 = vadd.xlane.f32.xlu0 %v457_v35 }
 0x11e   : > { %471 = vadd.xlane.f32.xlu1 %v458_v37 }
 0x120   : > { %441 = vadd.xlane.f32.xlu0 %v3383_v40 }
 0x122   : > { %443 = vadd.xlane.f32.xlu1 %v3385_v42 }
 0x124   : > { %473 = vadd.xlane.f32.xlu0 %v459_v45 }
 0x126   : > { %475 = vadd.xlane.f32.xlu1 %v460_v47 }
 0x195   : > { %v432_v60 = vpop.xlane.xlu0 %431 }
 0x196   : > { %v446_v61 = vmul.f32 0.0125, %v432_v60 }
 0x197   : > { %v464_v62 = vpop.xlane.xlu1 %463 }
 0x198   : > { %v486_v63 = vmul.f32 %v446_v61, %v446_v61  ;;  %v478_v0 = vmul.f32 0.0125, %v464_v62  ;;  %v531_v39 = vsub.f32 %v3353_v13, %v446_v61 }
 0x199   : > { %v430_v1 = vpop.xlane.xlu0 %429 }
 0x19a   : > { %v494_v2 = vsub.f32 %v478_v0, %v486_v63  ;;  %v445_v3 = vmul.f32 0.0125, %v430_v1 }
 0x19b   : > { %v462_v4 = vpop.xlane.xlu1 %461 }
 0x19c   : > { %v502_v5 = vadd.f32 1e-05, %v494_v2  ;;  %v485_v6 = vmul.f32 %v445_v3, %v445_v3  ;;  %v477_v7 = vmul.f32 0.0125, %v462_v4  ;;  %v530_v49 = vsub.f32 %v3355_v15, %v445_v3 }
 0x19d   : > { %v434_v8 = vpop.xlane.xlu0 %433 }
 0x19e   : > { %3078 = vrsqrt.f32 %v502_v5  ;;  %v493_v9 = vsub.f32 %v477_v7, %v485_v6  ;;  %v3393_v10 = vmul.f32 0.0125, %v434_v8 }
 0x19f   : > { %v436_v11 = vpop.xlane.xlu1 %435 }
 0x1a0   : > { %v501_v12 = vadd.f32 1e-05, %v493_v9  ;;  %v487_v14 = vmul.f32 %v3393_v10, %v3393_v10  ;;  %v3397_v16 = vmul.f32 0.0125, %v436_v11  ;;  %v532_v0 = vsub.f32 %v3361_v19, %v3393_v10 }
 0x1a1   : > { %v466_v17 = vpop.xlane.xlu0 %465 }
 0x1a2   : > { %3080 = vrsqrt.f32 %v501_v12  ;;  %v488_v18 = vmul.f32 %v3397_v16, %v3397_v16  ;;  %v479_v20 = vmul.f32 0.0125, %v466_v17  ;;  %v533_v9 = vsub.f32 %v3365_v22, %v3397_v16 }
 0x1a3   : > { %v468_v21 = vpop.xlane.xlu1 %467 }
 0x1a4   : > { %v495_v23 = vsub.f32 %v479_v20, %v487_v14  ;;  %v480_v24 = vmul.f32 0.0125, %v468_v21 }
 0x1a5   : > { %v438_v25 = vpop.xlane.xlu0 %437 }
 0x1a6   : > { %v503_v26 = vadd.f32 1e-05, %v495_v23  ;;  %v496_v27 = vsub.f32 %v480_v24, %v488_v18  ;;  %v3401_v28 = vmul.f32 0.0125, %v438_v25 }
 0x1a7   : > { %v440_v31 = vpop.xlane.xlu1 %439 }
 0x1a8   : > { %v3079_v33 = vpop.eup %3078  ;;  %3082 = vrsqrt.f32 %v503_v26  ;;  %v504_v34 = vadd.f32 1e-05, %v496_v27  ;;  %v489_v35 = vmul.f32 %v3401_v28, %v3401_v28  ;;  %v3410_v36 = vmul.f32 0.0125, %v440_v31 }
 0x1a9   : > { %v470_v37 = vpop.xlane.xlu0 %469  ;;  %v523_v38 = vmul.f32 %v3079_v33, %v3406_v29  ;;  %v534_v22 = vsub.f32 %v3373_v30, %v3401_v28 }
 0x1aa   : > { %3084 = vrsqrt.f32 %v504_v34  ;;  %v481_v41 = vmul.f32 0.0125, %v470_v37  ;;  %v490_v43 = vmul.f32 %v3410_v36, %v3410_v36  ;;  %v535_v26 = vsub.f32 %v3375_v32, %v3410_v36 }
 0x1ab   : > { %v472_v44 = vpop.xlane.xlu1 %471  ;;  %v539_v48 = vmul.f32 %v531_v39, %v523_v38 }
 0x1ac   : > { %v3081_v45 = vpop.eup %3080  ;;  %v497_v46 = vsub.f32 %v481_v41, %v489_v35  ;;  %v482_v47 = vmul.f32 0.0125, %v472_v44 }
 0x1ad   : > { %v442_v50 = vpop.xlane.xlu0 %441  ;;  %v522_v51 = vmul.f32 %v3081_v45, %v3406_v29  ;;  %v552_v59 = vadd.f32 %v3421_v52, %v539_v48 }
 0x1ae   : > { %v505_v13 = vadd.f32 1e-05, %v497_v46  ;;  %v498_v53 = vsub.f32 %v482_v47, %v490_v43  ;;  %v451_v54 = vmul.f32 0.0125, %v442_v50 }
 0x1af   : > { %v444_v55 = vpop.xlane.xlu1 %443  ;;  %v538_v56 = vmul.f32 %v530_v49, %v522_v51  ;;  %v560_v8 = vmax.f32 %v552_v59, 0.0  ;;  %v834_v49 = vld [vmem:[#allocation2 + $0x108] sm:$0xff] }
 0x1b0   : > { %3086 = vrsqrt.f32 %v505_v13  ;;  %v506_v57 = vadd.f32 1e-05, %v498_v53  ;;  %v491_v58 = vmul.f32 %v451_v54, %v451_v54  ;;  %v452_v60 = vmul.f32 0.0125, %v444_v55 }
 0x1b1   : > { %v474_v15 = vpop.xlane.xlu0 %473  ;;  %v551_v61 = vadd.f32 %v3421_v52, %v538_v56  ;;  %v536_v30 = vsub.f32 %v3383_v40, %v451_v54  ;;  %v833_v40 = vld [vmem:[#allocation2 + $0x100] sm:$0xff] }
 0x1b2   : > { %v3083_v62 = vpop.eup %3082  ;;  %3088 = vrsqrt.f32 %v506_v57  ;;  %v483_v63 = vmul.f32 0.0125, %v474_v15  ;;  %v492_v1 = vmul.f32 %v452_v60, %v452_v60  ;;  %v537_v32 = vsub.f32 %v3385_v42, %v452_v60  ;;  %v2389_v42 = vld [vmem:[%s3993_s2 + $0x1] ss:$0 sm:$0xff] }
 0x1b3   : > { %v476_v2 = vpop.xlane.xlu1 %475  ;;  %v559_v3 = vmax.f32 %v551_v61, 0.0  ;;  %v524_v4 = vmul.f32 %v3083_v62, %v3406_v29  ;;  %v2880_v50 = vpack.c.bf16 %v834_v49, %v833_v40 }
 0x1b4   : > { %v3085_v5 = vpop.eup %3084  ;;  %v499_v6 = vsub.f32 %v483_v63, %v491_v58  ;;  %v484_v7 = vmul.f32 0.0125, %v476_v2 }
 0x1b5   : > { %2612 = vmatprep.mubr.f32.mxu1 %v559_v3  ;;  %v540_v11 = vmul.f32 %v532_v0, %v524_v4  ;;  %v525_v12 = vmul.f32 %v3085_v5, %v3406_v29  ;;  %2881 = vmatprep.subr.bf16.mxu0 %v2880_v50  ;;  %v835_v0 = vld [vmem:[#allocation2 + $0x110] sm:$0xff]  ;;  %v837_v5 = vld [vmem:[#allocation2 + $0x120] sm:$0xff] }
 0x1b6   : > { %v507_v14 = vadd.f32 1e-05, %v499_v6  ;;  %v500_v17 = vsub.f32 %v484_v7, %v492_v1  ;;  %2613 = vmatmul.mubr.f32.vlgmr.msra.gmra.mrb[0].mxu1 %v560_v8  ;;  %2883 = vmatpush3.bf16.msra.mxu0 %v2880_v50  ;;  %v836_v1 = vld [vmem:[#allocation2 + $0x118] sm:$0xff]  ;;  %v838_v6 = vld [vmem:[#allocation2 + $0x128] sm:$0xff] }
 0x1b7   : > { %v553_v19 = vadd.f32 %v3421_v52, %v540_v11  ;;  %v541_v10 = vmul.f32 %v533_v9, %v525_v12  ;;  %v2884_v2 = vpack.c.bf16 %v836_v1, %v835_v0  ;;  %v2888_v8 = vpack.c.bf16 %v838_v6, %v837_v5 }
 0x1b8   : > { %3090 = vrsqrt.f32 %v507_v14  ;;  %v508_v18 = vadd.f32 1e-05, %v500_v17  ;;  %v839_v14 = vld [vmem:[#allocation2 + $0x130] sm:$0xff]  ;;  %v840_v17 = vld [vmem:[#allocation2 + $0x138] sm:$0xff] }
 0x1b9   : > { %v561_v20 = vmax.f32 %v553_v19, 0.0  ;;  %v554_v21 = vadd.f32 %v3421_v52, %v541_v10  ;;  %2885 = vmatprep.subr.bf16.mxu0 %v2884_v2  ;;  %v2892_v19 = vpack.c.bf16 %v840_v17, %v839_v14 }
 0x1ba   : > { %v3087_v23 = vpop.eup %3086  ;;  %3092 = vrsqrt.f32 %v508_v18  ;;  %2887 = vmatpush3.bf16.msra.mxu0 %v2884_v2 }
 0x1bb   : > { %2615 = vmatprep.mubr.f32.mxu1 %v561_v20  ;;  %v562_v16 = vmax.f32 %v554_v21, 0.0  ;;  %v526_v24 = vmul.f32 %v3087_v23, %v3406_v29  ;;  %2889 = vmatprep.subr.bf16.mxu0 %v2888_v8  ;;  %v841_v20 = vld [vmem:[#allocation2 + $0x140] sm:$0xff]  ;;  %v842_v21 = vld [vmem:[#allocation2 + $0x148] sm:$0xff] }
 0x1bc   : > { %v3089_v25 = vpop.eup %3088  ;;  %v2896_v23 = vpack.c.bf16 %v842_v21, %v841_v20 }
 0x1bd   : > { %2616 = vmatmul.mubr.f32.gmra.mrb[2].mxu1 %v562_v16  ;;  %v542_v27 = vmul.f32 %v534_v22, %v526_v24  ;;  %v527_v31 = vmul.f32 %v3089_v25, %v3406_v29  ;;  %v843_v22 = vld [vmem:[#allocation2 + $0x150] sm:$0xff]  ;;  %v844_v16 = vld [vmem:[#allocation2 + $0x158] sm:$0xff]  ;;  %v845_v25 = vld [vmem:[#allocation2 + $0x160] sm:$0xff] }
 0x1be   : > { %2891 = vmatpush3.bf16.msra.mxu0 %v2888_v8  ;;  %v2900_v24 = vpack.c.bf16 %v844_v16, %v843_v22 }
 0x1bf   : > { %v555_v33 = vadd.f32 %v3421_v52, %v542_v27  ;;  %v543_v34 = vmul.f32 %v535_v26, %v527_v31  ;;  %2893 = vmatprep.subr.bf16.mxu0 %v2892_v19  ;;  %v846_v26 = vld [vmem:[#allocation2 + $0x168] sm:$0xff]  ;;  %v847_v31 = vld [vmem:[#allocation2 + $0x170] sm:$0xff] }
 0x1c0   : > { %v2904_v27 = vpack.c.bf16 %v846_v26, %v845_v25 }
 0x1c1   : > { %v563_v35 = vmax.f32 %v555_v33, 0.0  ;;  %v556_v37 = vadd.f32 %v3421_v52, %v543_v34  ;;  %v848_v33 = vld [vmem:[#allocation2 + $0x178] sm:$0xff] }
 0x1c2   : > { %v3091_v38 = vpop.eup %3090  ;;  %2895 = vmatpush3.bf16.msra.mxu0 %v2892_v19  ;;  %v2908_v34 = vpack.c.bf16 %v848_v33, %v847_v31 }
 0x1c3   : > { %2618 = vmatprep.mubr.f32.mxu1 %v563_v35  ;;  %v564_v28 = vmax.f32 %v556_v37, 0.0  ;;  %v528_v39 = vmul.f32 %v3091_v38, %v3406_v29  ;;  %2897 = vmatprep.subr.bf16.mxu0 %v2896_v23 }
 0x1c4   : > { %v3093_v41 = vpop.eup %3092 }
 0x1c5   : > { %2619 = vmatmul.mubr.f32.gmra.mrb[4].mxu1 %v564_v28  ;;  %v544_v36 = vmul.f32 %v536_v30, %v528_v39  ;;  %v529_v43 = vmul.f32 %v3093_v41, %v3406_v29 }
 0x1c6   : > { %2899 = vmatpush3.bf16.msra.mxu0 %v2896_v23  ;;  %v3518_v23 = vld [vmem:[%s3995_s4 + $0x1] ss:$0 sm:$0xff] }
 0x1c7   : > { %v557_v44 = vadd.f32 %v3421_v52, %v544_v36  ;;  %v545_v45 = vmul.f32 %v537_v32, %v529_v43  ;;  %2901 = vmatprep.subr.bf16.mxu0 %v2900_v24 }
 0x1c9   : > { %v565_v46 = vmax.f32 %v557_v44, 0.0  ;;  %v558_v47 = vadd.f32 %v3421_v52, %v545_v45 }
 0x1ca   : > { %2903 = vmatpush3.bf16.msra.mxu0 %v2900_v24 }
 0x1cb   : > { %2621 = vmatprep.mubr.f32.mxu1 %v565_v46  ;;  %v566_v48 = vmax.f32 %v558_v47, 0.0  ;;  %2905 = vmatprep.subr.bf16.mxu0 %v2904_v27 }
 0x1cd   : > { %2622 = vmatmul.mubr.f32.gmra.mrb[6].mxu1 %v566_v48 }
 0x1ce   : > { %2907 = vmatpush3.bf16.msra.mxu0 %v2904_v27 }
 0x1cf   : > { %2909 = vmatprep.subr.bf16.mxu0 %v2908_v34 }
 0x1d2   : > { %2911 = vmatpush3.bf16.msra.mxu0 %v2908_v34 }
 0x289   : > { %v2614_v51 = vpop.f32.mrb[0].mxu1 }
 0x28a   : > { %v3450_v29 = vadd.f32 %v2614_v51, %v2389_v42  ;;  %v655_v13 = vpop.f32.mrb[1].mxu1 }
 0x28b   : > { %v3452_v53 = vadd.f32 %v2389_v42, %v655_v13 }
 0x28c   : > { %696 = vadd.xlane.f32.xlu1 %v3450_v29  ;;  %v719_v52 = vmul.f32 %v3450_v29, %v3450_v29 }
 0x28d   : > { %694 = vadd.xlane.f32.xlu0 %v3452_v53  ;;  %v718_v54 = vmul.f32 %v3452_v53, %v3452_v53 }
 0x290   : > { %728 = vadd.xlane.f32.xlu1 %v719_v52  ;;  %v2617_v55 = vpop.f32.mrb[2].mxu1 }
 0x291   : > { %v3460_v56 = vadd.f32 %v2617_v55, %v2389_v42  ;;  %726 = vadd.xlane.f32.xlu0 %v718_v54  ;;  %v665_v57 = vpop.f32.mrb[3].mxu1 }
 0x292   : > { %v3462_v58 = vadd.f32 %v2389_v42, %v665_v57 }
 0x293   : > { %v721_v59 = vmul.f32 %v3460_v56, %v3460_v56 }
 0x294   : > { %700 = vadd.xlane.f32.xlu1 %v3460_v56  ;;  %v720_v60 = vmul.f32 %v3462_v58, %v3462_v58 }
 0x295   : > { %698 = vadd.xlane.f32.xlu0 %v3462_v58 }
 0x298   : > { %732 = vadd.xlane.f32.xlu1 %v721_v59  ;;  %v2620_v15 = vpop.f32.mrb[4].mxu1 }
 0x299   : > { %v3470_v61 = vadd.f32 %v2620_v15, %v2389_v42  ;;  %730 = vadd.xlane.f32.xlu0 %v720_v60  ;;  %v675_v62 = vpop.f32.mrb[5].mxu1 }
 0x29a   : > { %v3472_v63 = vadd.f32 %v2389_v42, %v675_v62 }
 0x29b   : > { %v723_v3 = vmul.f32 %v3470_v61, %v3470_v61 }
 0x29c   : > { %704 = vadd.xlane.f32.xlu1 %v3470_v61  ;;  %v722_v4 = vmul.f32 %v3472_v63, %v3472_v63 }
 0x29d   : > { %702 = vadd.xlane.f32.xlu0 %v3472_v63 }
 0x2a0   : > { %736 = vadd.xlane.f32.xlu1 %v723_v3  ;;  %v2623_v7 = vpop.f32.mrb[6].mxu1  ;;  %v3505_v3 = vld [vmem:[%s3994_s3 + $0x1] ss:$0 sm:$0xff] }
 0x2a1   : > { %v3480_v9 = vadd.f32 %v2623_v7, %v2389_v42  ;;  %734 = vadd.xlane.f32.xlu0 %v722_v4  ;;  %v685_v11 = vpop.f32.mrb[7].mxu1 }
 0x2a2   : > { %v3482_v12 = vadd.f32 %v2389_v42, %v685_v11 }
 0x2a3   : > { %v725_v10 = vmul.f32 %v3480_v9, %v3480_v9 }
 0x2a4   : > { %708 = vadd.xlane.f32.xlu1 %v3480_v9  ;;  %v724_v18 = vmul.f32 %v3482_v12, %v3482_v12 }
 0x2a5   : > { %706 = vadd.xlane.f32.xlu0 %v3482_v12 }
 0x2a8   : > { %740 = vadd.xlane.f32.xlu1 %v725_v10 }
 0x2a9   : > { %738 = vadd.xlane.f32.xlu0 %v724_v18 }
 0x319   : > { %v697_v35 = vpop.xlane.xlu1 %696 }
 0x31a   : > { %v711_v37 = vmul.f32 0.015625, %v697_v35  ;;  %v695_v38 = vpop.xlane.xlu0 %694 }
 0x31b   : > { %v710_v30 = vmul.f32 0.015625, %v695_v38 }
 0x31c   : > { %v751_v39 = vmul.f32 %v711_v37, %v711_v37  ;;  %v796_v14 = vsub.f32 %v3450_v29, %v711_v37 }
 0x31d   : > { %v729_v28 = vpop.xlane.xlu1 %728  ;;  %v750_v36 = vmul.f32 %v710_v30, %v710_v30  ;;  %v795_v18 = vsub.f32 %v3452_v53, %v710_v30 }
 0x31e   : > { %v743_v41 = vmul.f32 0.015625, %v729_v28  ;;  %v727_v32 = vpop.xlane.xlu0 %726 }
 0x31f   : > { %v742_v43 = vmul.f32 0.015625, %v727_v32 }
 0x320   : > { %v759_v44 = vsub.f32 %v743_v41, %v751_v39 }
 0x321   : > { %v758_v45 = vsub.f32 %v742_v43, %v750_v36  ;;  %v701_v46 = vpop.xlane.xlu1 %700 }
 0x322   : > { %v767_v47 = vadd.f32 1e-05, %v759_v44  ;;  %v3490_v48 = vmul.f32 0.015625, %v701_v46  ;;  %v699_v40 = vpop.xlane.xlu0 %698 }
 0x323   : > { %v766_v49 = vadd.f32 1e-05, %v758_v45  ;;  %v3492_v50 = vmul.f32 0.015625, %v699_v40 }
 0x324   : > { %3094 = vrsqrt.f32 %v767_v47  ;;  %v753_v51 = vmul.f32 %v3490_v48, %v3490_v48  ;;  %v798_v38 = vsub.f32 %v3460_v56, %v3490_v48 }
 0x325   : > { %3096 = vrsqrt.f32 %v766_v49  ;;  %v733_v42 = vpop.xlane.xlu1 %732  ;;  %v752_v54 = vmul.f32 %v3492_v50, %v3492_v50  ;;  %v797_v46 = vsub.f32 %v3462_v58, %v3492_v50 }
 0x326   : > { %v745_v13 = vmul.f32 0.015625, %v733_v42  ;;  %v731_v52 = vpop.xlane.xlu0 %730 }
 0x327   : > { %v744_v55 = vmul.f32 0.015625, %v731_v52 }
 0x328   : > { %v761_v57 = vsub.f32 %v745_v13, %v753_v51 }
 0x329   : > { %v760_v59 = vsub.f32 %v744_v55, %v752_v54  ;;  %v705_v60 = vpop.xlane.xlu1 %704 }
 0x32a   : > { %v769_v15 = vadd.f32 1e-05, %v761_v57  ;;  %v3498_v62 = vmul.f32 0.015625, %v705_v60  ;;  %v703_v0 = vpop.xlane.xlu0 %702 }
 0x32b   : > { %v768_v1 = vadd.f32 1e-05, %v760_v59  ;;  %v3500_v2 = vmul.f32 0.015625, %v703_v0 }
 0x32c   : > { %3098 = vrsqrt.f32 %v769_v15  ;;  %v755_v6 = vmul.f32 %v3498_v62, %v3498_v62  ;;  %v800_v58 = vsub.f32 %v3470_v61, %v3498_v62 }
 0x32d   : > { %3100 = vrsqrt.f32 %v768_v1  ;;  %v737_v4 = vpop.xlane.xlu1 %736  ;;  %v754_v19 = vmul.f32 %v3500_v2, %v3500_v2  ;;  %v799_v60 = vsub.f32 %v3472_v63, %v3500_v2 }
 0x32e   : > { %v3095_v5 = vpop.eup %3094  ;;  %v747_v7 = vmul.f32 0.015625, %v737_v4  ;;  %v735_v8 = vpop.xlane.xlu0 %734 }
 0x32f   : > { %v3097_v11 = vpop.eup %3096  ;;  %v788_v17 = vmul.f32 %v3095_v5, %v3505_v3  ;;  %v746_v10 = vmul.f32 0.015625, %v735_v8 }
 0x330   : > { %v763_v20 = vsub.f32 %v747_v7, %v755_v6  ;;  %v787_v21 = vmul.f32 %v3097_v11, %v3505_v3 }
 0x331   : > { %v762_v22 = vsub.f32 %v746_v10, %v754_v19  ;;  %v709_v16 = vpop.xlane.xlu1 %708  ;;  %v804_v24 = vmul.f32 %v796_v14, %v788_v17 }
 0x332   : > { %v771_v29 = vadd.f32 1e-05, %v763_v20  ;;  %v717_v25 = vmul.f32 0.015625, %v709_v16  ;;  %v707_v26 = vpop.xlane.xlu0 %706  ;;  %v803_v27 = vmul.f32 %v795_v18, %v787_v21  ;;  %v1099_v21 = vld [vmem:[#allocation2 + $0x188] sm:$0xff] }
 0x333   : > { %v770_v31 = vadd.f32 1e-05, %v762_v22  ;;  %v716_v33 = vmul.f32 0.015625, %v707_v26  ;;  %v817_v34 = vadd.f32 %v3518_v23, %v804_v24 }
 0x334   : > { %3102 = vrsqrt.f32 %v771_v29  ;;  %v816_v53 = vadd.f32 %v3518_v23, %v803_v27  ;;  %v757_v30 = vmul.f32 %v717_v25, %v717_v25  ;;  %v802_v61 = vsub.f32 %v3480_v9, %v717_v25  ;;  %v1098_v9 = vld [vmem:[#allocation2 + $0x180] sm:$0xff] }
 0x335   : > { %3104 = vrsqrt.f32 %v770_v31  ;;  %v741_v35 = vpop.xlane.xlu1 %740  ;;  %v756_v36 = vmul.f32 %v716_v33, %v716_v33  ;;  %v825_v44 = vmax.f32 %v817_v34, 0.0  ;;  %v801_v63 = vsub.f32 %v3482_v12, %v716_v33  ;;  %v2392_v12 = vld [vmem:[%s3993_s2 + $0x2] ss:$0 sm:$0xff] }
 0x336   : > { %v3099_v37 = vpop.eup %3098  ;;  %v749_v28 = vmul.f32 0.015625, %v741_v35  ;;  %v739_v39 = vpop.xlane.xlu0 %738  ;;  %v824_v41 = vmax.f32 %v816_v53, 0.0  ;;  %v2912_v22 = vpack.c.bf16 %v1099_v21, %v1098_v9 }
 0x337   : > { %v3101_v32 = vpop.eup %3100  ;;  %v748_v43 = vmul.f32 0.015625, %v739_v39  ;;  %v790_v45 = vmul.f32 %v3099_v37, %v3505_v3  ;;  %v1101_v39 = vld [vmem:[#allocation2 + $0x198] sm:$0xff] }
 0x338   : > { %v765_v47 = vsub.f32 %v749_v28, %v757_v30  ;;  %2656 = vmatprep.mubr.f32.mxu0 %v824_v41  ;;  %v789_v40 = vmul.f32 %v3101_v32, %v3505_v3  ;;  %2913 = vmatprep.subr.bf16.mxu1 %v2912_v22  ;;  %v1100_v28 = vld [vmem:[#allocation2 + $0x190] sm:$0xff] }
 0x339   : > { %v764_v49 = vsub.f32 %v748_v43, %v756_v36  ;;  %2657 = vmatmul.mubr.f32.vlgmr.msra.gmra.mrb[8].mxu0 %v825_v44  ;;  %v806_v56 = vmul.f32 %v798_v38, %v790_v45  ;;  %2915 = vmatpush3.bf16.msra.mxu1 %v2912_v22  ;;  %v2916_v41 = vpack.c.bf16 %v1101_v39, %v1100_v28  ;;  %v1102_v43 = vld [vmem:[#allocation2 + $0x1a0] sm:$0xff]  ;;  %v1103_v44 = vld [vmem:[#allocation2 + $0x1a8] sm:$0xff] }
 0x33a   : > { %v773_v48 = vadd.f32 1e-05, %v765_v47  ;;  %v805_v42 = vmul.f32 %v797_v46, %v789_v40  ;;  %v2920_v45 = vpack.c.bf16 %v1103_v44, %v1102_v43 }
 0x33b   : > { %v772_v51 = vadd.f32 1e-05, %v764_v49  ;;  %v819_v13 = vadd.f32 %v3518_v23, %v806_v56  ;;  %2917 = vmatprep.subr.bf16.mxu1 %v2916_v41  ;;  %v1104_v56 = vld [vmem:[#allocation2 + $0x1b0] sm:$0xff] }
 0x33c   : > { %3106 = vrsqrt.f32 %v773_v48  ;;  %v818_v52 = vadd.f32 %v3518_v23, %v805_v42  ;;  %v1105_v48 = vld [vmem:[#allocation2 + $0x1b8] sm:$0xff] }
 0x33d   : > { %3108 = vrsqrt.f32 %v772_v51  ;;  %v827_v50 = vmax.f32 %v819_v13, 0.0  ;;  %2919 = vmatpush3.bf16.msra.mxu1 %v2916_v41  ;;  %v2924_v42 = vpack.c.bf16 %v1105_v48, %v1104_v56 }
 0x33e   : > { %v3103_v54 = vpop.eup %3102  ;;  %v826_v55 = vmax.f32 %v818_v52, 0.0  ;;  %2921 = vmatprep.subr.bf16.mxu1 %v2920_v45  ;;  %v1106_v52 = vld [vmem:[#allocation2 + $0x1c0] sm:$0xff] }
 0x33f   : > { %v3105_v57 = vpop.eup %3104  ;;  %v792_v59 = vmul.f32 %v3103_v54, %v3505_v3  ;;  %v1107_v54 = vld [vmem:[#allocation2 + $0x1c8] sm:$0xff] }
 0x340   : > { %2659 = vmatprep.mubr.f32.mxu0 %v826_v55  ;;  %v791_v15 = vmul.f32 %v3105_v57, %v3505_v3  ;;  %v2928_v55 = vpack.c.bf16 %v1107_v54, %v1106_v52  ;;  %v1108_v57 = vld [vmem:[#allocation2 + $0x1d0] sm:$0xff] }
 0x341   : > { %2660 = vmatmul.mubr.f32.gmra.mrb[10].mxu0 %v827_v50  ;;  %v808_v0 = vmul.f32 %v800_v58, %v792_v59  ;;  %2923 = vmatpush3.bf16.msra.mxu1 %v2920_v45  ;;  %v1109_v58 = vld [vmem:[#allocation2 + $0x1d8] sm:$0xff]  ;;  %v1110_v59 = vld [vmem:[#allocation2 + $0x1e0] sm:$0xff] }
 0x342   : > { %v807_v1 = vmul.f32 %v799_v60, %v791_v15  ;;  %2925 = vmatprep.subr.bf16.mxu1 %v2924_v42  ;;  %v2932_v50 = vpack.c.bf16 %v1109_v58, %v1108_v57  ;;  %v1111_v60 = vld [vmem:[#allocation2 + $0x1e8] sm:$0xff] }
 0x343   : > { %v821_v4 = vadd.f32 %v3518_v23, %v808_v0  ;;  %v2936_v15 = vpack.c.bf16 %v1111_v60, %v1110_v59  ;;  %v1112_v0 = vld [vmem:[#allocation2 + $0x1f0] sm:$0xff] }
 0x344   : > { %v820_v5 = vadd.f32 %v3518_v23, %v807_v1  ;;  %v1113_v1 = vld [vmem:[#allocation2 + $0x1f8] sm:$0xff] }
 0x345   : > { %v829_v62 = vmax.f32 %v821_v4, 0.0  ;;  %2927 = vmatpush3.bf16.msra.mxu1 %v2924_v42  ;;  %v2940_v4 = vpack.c.bf16 %v1113_v1, %v1112_v0 }
 0x346   : > { %v3107_v6 = vpop.eup %3106  ;;  %v828_v7 = vmax.f32 %v820_v5, 0.0  ;;  %2929 = vmatprep.subr.bf16.mxu1 %v2928_v55 }
 0x347   : > { %v3109_v8 = vpop.eup %3108  ;;  %v794_v11 = vmul.f32 %v3107_v6, %v3505_v3 }
 0x348   : > { %2662 = vmatprep.mubr.f32.mxu0 %v828_v7  ;;  %v793_v2 = vmul.f32 %v3109_v8, %v3505_v3 }
 0x349   : > { %2663 = vmatmul.mubr.f32.gmra.mrb[12].mxu0 %v829_v62  ;;  %v810_v14 = vmul.f32 %v802_v61, %v794_v11  ;;  %2931 = vmatpush3.bf16.msra.mxu1 %v2928_v55  ;;  %v3615_v55 = vld [vmem:[%s3995_s4 + $0x2] ss:$0 sm:$0xff] }
 0x34a   : > { %v809_v17 = vmul.f32 %v801_v63, %v793_v2  ;;  %2933 = vmatprep.subr.bf16.mxu1 %v2932_v50 }
 0x34b   : > { %v823_v19 = vadd.f32 %v3518_v23, %v810_v14 }
 0x34c   : > { %v822_v10 = vadd.f32 %v3518_v23, %v809_v17 }
 0x34d   : > { %v831_v20 = vmax.f32 %v823_v19, 0.0  ;;  %2935 = vmatpush3.bf16.msra.mxu1 %v2932_v50 }
 0x34e   : > { %v830_v18 = vmax.f32 %v822_v10, 0.0  ;;  %2937 = vmatprep.subr.bf16.mxu1 %v2936_v15 }
 0x350   : > { %2665 = vmatprep.mubr.f32.mxu0 %v830_v18 }
 0x351   : > { %2666 = vmatmul.mubr.f32.gmra.mrb[14].mxu0 %v831_v20  ;;  %2939 = vmatpush3.bf16.msra.mxu1 %v2936_v15 }
 0x352   : > { %2941 = vmatprep.subr.bf16.mxu1 %v2940_v4 }
 0x355   : > { %2943 = vmatpush3.bf16.msra.mxu1 %v2940_v4 }
 0x40c   : > { %v2658_v3 = vpop.f32.mrb[8].mxu0 }
 0x40d   : > { %v3547_v16 = vadd.f32 %v2658_v3, %v2392_v12  ;;  %v920_v24 = vpop.f32.mrb[9].mxu0 }
 0x40e   : > { %v3549_v29 = vadd.f32 %v2392_v12, %v920_v24 }
 0x40f   : > { %961 = vadd.xlane.f32.xlu1 %v3547_v16  ;;  %v984_v23 = vmul.f32 %v3547_v16, %v3547_v16 }
 0x410   : > { %959 = vadd.xlane.f32.xlu0 %v3549_v29  ;;  %v983_v25 = vmul.f32 %v3549_v29, %v3549_v29 }
 0x413   : > { %993 = vadd.xlane.f32.xlu1 %v984_v23 }
 0x414   : > { %991 = vadd.xlane.f32.xlu0 %v983_v25  ;;  %v2661_v26 = vpop.f32.mrb[10].mxu0 }
 0x415   : > { %v3557_v27 = vadd.f32 %v2661_v26, %v2392_v12  ;;  %v930_v31 = vpop.f32.mrb[11].mxu0 }
 0x416   : > { %v3559_v33 = vadd.f32 %v2392_v12, %v930_v31 }
 0x417   : > { %965 = vadd.xlane.f32.xlu1 %v3557_v27  ;;  %v986_v34 = vmul.f32 %v3557_v27, %v3557_v27 }
 0x418   : > { %963 = vadd.xlane.f32.xlu0 %v3559_v33  ;;  %v985_v53 = vmul.f32 %v3559_v33, %v3559_v33 }
 0x41b   : > { %997 = vadd.xlane.f32.xlu1 %v986_v34 }
 0x41c   : > { %995 = vadd.xlane.f32.xlu0 %v985_v53  ;;  %v2664_v35 = vpop.f32.mrb[12].mxu0 }
 0x41d   : > { %v3567_v37 = vadd.f32 %v2664_v35, %v2392_v12  ;;  %v940_v38 = vpop.f32.mrb[13].mxu0 }
 0x41e   : > { %v3569_v30 = vadd.f32 %v2392_v12, %v940_v38 }
 0x41f   : > { %969 = vadd.xlane.f32.xlu1 %v3567_v37  ;;  %v988_v32 = vmul.f32 %v3567_v37, %v3567_v37 }
 0x420   : > { %967 = vadd.xlane.f32.xlu0 %v3569_v30  ;;  %v987_v36 = vmul.f32 %v3569_v30, %v3569_v30 }
 0x423   : > { %1001 = vadd.xlane.f32.xlu1 %v988_v32  ;;  %v3602_v32 = vld [vmem:[%s3994_s3 + $0x2] ss:$0 sm:$0xff] }
 0x424   : > { %999 = vadd.xlane.f32.xlu0 %v987_v36  ;;  %v2667_v46 = vpop.f32.mrb[14].mxu0 }
 0x425   : > { %v3577_v47 = vadd.f32 %v2667_v46, %v2392_v12  ;;  %v950_v40 = vpop.f32.mrb[15].mxu0 }
 0x426   : > { %v3579_v49 = vadd.f32 %v2392_v12, %v950_v40 }
 0x427   : > { %973 = vadd.xlane.f32.xlu1 %v3577_v47  ;;  %v990_v51 = vmul.f32 %v3577_v47, %v3577_v47 }
 0x428   : > { %971 = vadd.xlane.f32.xlu0 %v3579_v49  ;;  %v989_v13 = vmul.f32 %v3579_v49, %v3579_v49 }
 0x42b   : > { %1005 = vadd.xlane.f32.xlu1 %v990_v51 }
 0x42c   : > { %1003 = vadd.xlane.f32.xlu0 %v989_v13 }
 0x49c   : > { %v962_v5 = vpop.xlane.xlu1 %961 }
 0x49d   : > { %v976_v6 = vmul.f32 0.020833334, %v962_v5  ;;  %v960_v7 = vpop.xlane.xlu0 %959 }
 0x49e   : > { %v975_v8 = vmul.f32 0.020833334, %v960_v7 }
 0x49f   : > { %v1016_v62 = vmul.f32 %v976_v6, %v976_v6  ;;  %v1061_v56 = vsub.f32 %v3547_v16, %v976_v6 }
 0x4a0   : > { %v994_v61 = vpop.xlane.xlu1 %993  ;;  %v1015_v2 = vmul.f32 %v975_v8, %v975_v8  ;;  %v1060_v13 = vsub.f32 %v3549_v29, %v975_v8 }
 0x4a1   : > { %v1008_v11 = vmul.f32 0.020833334, %v994_v61  ;;  %v992_v63 = vpop.xlane.xlu0 %991 }
 0x4a2   : > { %v1007_v14 = vmul.f32 0.020833334, %v992_v63 }
 0x4a3   : > { %v1024_v17 = vsub.f32 %v1008_v11, %v1016_v62 }
 0x4a4   : > { %v1023_v19 = vsub.f32 %v1007_v14, %v1015_v2  ;;  %v966_v10 = vpop.xlane.xlu1 %965 }
 0x4a5   : > { %v1032_v18 = vadd.f32 1e-05, %v1024_v17  ;;  %v3587_v20 = vmul.f32 0.020833334, %v966_v10  ;;  %v964_v9 = vpop.xlane.xlu0 %963 }
 0x4a6   : > { %v1031_v21 = vadd.f32 1e-05, %v1023_v19  ;;  %v3589_v22 = vmul.f32 0.020833334, %v964_v9 }
 0x4a7   : > { %3110 = vrsqrt.f32 %v1032_v18  ;;  %v1018_v3 = vmul.f32 %v3587_v20, %v3587_v20  ;;  %v1063_v7 = vsub.f32 %v3557_v27, %v3587_v20 }
 0x4a8   : > { %3112 = vrsqrt.f32 %v1031_v21  ;;  %v998_v12 = vpop.xlane.xlu1 %997  ;;  %v1017_v25 = vmul.f32 %v3589_v22, %v3589_v22  ;;  %v1062_v10 = vsub.f32 %v3559_v33, %v3589_v22 }
 0x4a9   : > { %v1010_v24 = vmul.f32 0.020833334, %v998_v12  ;;  %v996_v23 = vpop.xlane.xlu0 %995 }
 0x4aa   : > { %v1009_v26 = vmul.f32 0.020833334, %v996_v23 }
 0x4ab   : > { %v1026_v31 = vsub.f32 %v1010_v24, %v1018_v3 }
 0x4ac   : > { %v1025_v34 = vsub.f32 %v1009_v26, %v1017_v25  ;;  %v970_v53 = vpop.xlane.xlu1 %969 }
 0x4ad   : > { %v1034_v35 = vadd.f32 1e-05, %v1026_v31  ;;  %v3595_v38 = vmul.f32 0.020833334, %v970_v53  ;;  %v968_v28 = vpop.xlane.xlu0 %967 }
 0x4ae   : > { %v1033_v39 = vadd.f32 1e-05, %v1025_v34  ;;  %v3597_v41 = vmul.f32 0.020833334, %v968_v28 }
 0x4af   : > { %3114 = vrsqrt.f32 %v1034_v35  ;;  %v1020_v44 = vmul.f32 %v3595_v38, %v3595_v38  ;;  %v1065_v33 = vsub.f32 %v3567_v37, %v3595_v38 }
 0x4b0   : > { %3116 = vrsqrt.f32 %v1033_v39  ;;  %v1002_v36 = vpop.xlane.xlu1 %1001  ;;  %v1019_v42 = vmul.f32 %v3597_v41, %v3597_v41  ;;  %v1064_v53 = vsub.f32 %v3569_v30, %v3597_v41 }
 0x4b1   : > { %v3111_v43 = vpop.eup %3110  ;;  %v1012_v45 = vmul.f32 0.020833334, %v1002_v36  ;;  %v1000_v46 = vpop.xlane.xlu0 %999 }
 0x4b2   : > { %v3113_v40 = vpop.eup %3112  ;;  %v1053_v48 = vmul.f32 %v3111_v43, %v3602_v32  ;;  %v1011_v51 = vmul.f32 0.020833334, %v1000_v46 }
 0x4b3   : > { %v1028_v52 = vsub.f32 %v1012_v45, %v1020_v44  ;;  %v1052_v54 = vmul.f32 %v3113_v40, %v3602_v32 }
 0x4b4   : > { %v1027_v57 = vsub.f32 %v1011_v51, %v1019_v42  ;;  %v974_v58 = vpop.xlane.xlu1 %973  ;;  %v1069_v50 = vmul.f32 %v1061_v56, %v1053_v48 }
 0x4b5   : > { %v1036_v16 = vadd.f32 1e-05, %v1028_v52  ;;  %v982_v59 = vmul.f32 0.020833334, %v974_v58  ;;  %v972_v60 = vpop.xlane.xlu0 %971  ;;  %v1068_v15 = vmul.f32 %v1060_v13, %v1052_v54  ;;  %v3250_v58 = vmov 1  }
 0x4b6   : > { %v1035_v0 = vadd.f32 1e-05, %v1027_v57  ;;  %v981_v1 = vmul.f32 0.020833334, %v972_v60  ;;  %v1082_v4 = vadd.f32 %v3615_v55, %v1069_v50 }
 0x4b7   : > { %3118 = vrsqrt.f32 %v1036_v16  ;;  %v1081_v29 = vadd.f32 %v3615_v55, %v1068_v15  ;;  %v1022_v8 = vmul.f32 %v982_v59, %v982_v59  ;;  %v1067_v37 = vsub.f32 %v3577_v47, %v982_v59 }
 0x4b8   : > { %3120 = vrsqrt.f32 %v1035_v0  ;;  %v1006_v5 = vpop.xlane.xlu1 %1005  ;;  %v1021_v2 = vmul.f32 %v981_v1, %v981_v1  ;;  %v1090_v17 = vmax.f32 %v1082_v4, 0.0  ;;  %v1066_v30 = vsub.f32 %v3579_v49, %v981_v1  ;;  %v2395_v49 = vld [vmem:[%s3993_s2 + $0x3] ss:$0 sm:$0xff] }
 0x4b9   : > { %v3115_v6 = vpop.eup %3114  ;;  %v1014_v61 = vmul.f32 0.020833334, %v1006_v5  ;;  %v1004_v62 = vpop.xlane.xlu0 %1003  ;;  %v1089_v11 = vmax.f32 %v1081_v29, 0.0  ;;  %v3249_v47 = vmov 0  }
 0x4ba   : > { %v3117_v63 = vpop.eup %3116  ;;  %v1013_v14 = vmul.f32 0.020833334, %v1004_v62  ;;  %v1055_v19 = vmul.f32 %v3115_v6, %v3602_v32  ;;  %3063 = vset.pattern.permute.xlu1 %v3249_v47  ;;  %3065 = vset.pattern.permute.xlu0 %v3249_v47  ;;  %v3668_v62 = vld [vmem:[#allocation2 + $0x201] ss:$0 sm:$0xff] }
 0x4bb   : > { %v1030_v18 = vsub.f32 %v1014_v61, %v1022_v8  ;;  %2700 = vmatprep.mubr.f32.mxu1 %v1089_v11  ;;  %v1054_v9 = vmul.f32 %v3117_v63, %v3602_v32  ;;  %v3666_v61 = vld [vmem:[#allocation2 + $0x200] ss:$0 sm:$0xff] }
 0x4bc   : > { %v1029_v21 = vsub.f32 %v1013_v14, %v1021_v2  ;;  %2701 = vmatmul.mubr.f32.vlgmr.msra.gmra.mrb[8].mxu1 %v1090_v17  ;;  %v1071_v27 = vmul.f32 %v1063_v7, %v1055_v19  ;;  %v3675_v17 = vld [vmem:[%s3993_s2 + $0x4] ss:$0 sm:$0xff] }
 0x4bd   : > { %v1038_v20 = vadd.f32 1e-05, %v1030_v18  ;;  %v1070_v12 = vmul.f32 %v1062_v10, %v1054_v9 }
 0x4be   : > { %v1037_v3 = vadd.f32 1e-05, %v1029_v21  ;;  %v1084_v24 = vadd.f32 %v3615_v55, %v1071_v27 }
 0x4bf   : > { %3122 = vrsqrt.f32 %v1038_v20  ;;  %v1083_v23 = vadd.f32 %v3615_v55, %v1070_v12 }
 0x4c0   : > { %3124 = vrsqrt.f32 %v1037_v3  ;;  %v1092_v22 = vmax.f32 %v1084_v24, 0.0 }
 0x4c1   : > { %v3119_v25 = vpop.eup %3118  ;;  %v1091_v26 = vmax.f32 %v1083_v23, 0.0 }
 0x4c2   : > { %v3121_v31 = vpop.eup %3120  ;;  %v1057_v34 = vmul.f32 %v3119_v25, %v3602_v32 }
 0x4c3   : > { %2703 = vmatprep.mubr.f32.mxu1 %v1091_v26  ;;  %v1056_v35 = vmul.f32 %v3121_v31, %v3602_v32 }
 0x4c4   : > { %2704 = vmatmul.mubr.f32.gmra.mrb[10].mxu1 %v1092_v22  ;;  %v1073_v28 = vmul.f32 %v1065_v33, %v1057_v34  ;;  %v1492_v34 = vld [vmem:[#allocation2 + $0x280] sm:$0xff] }
 0x4c5   : > { %v1072_v39 = vmul.f32 %v1064_v53, %v1056_v35  ;;  %v1493_v53 = vld [vmem:[#allocation2 + $0x288] sm:$0xff] }
 0x4c6   : > { %v1086_v36 = vadd.f32 %v3615_v55, %v1073_v28  ;;  %v2944_v35 = vpack.c.bf16 %v1493_v53, %v1492_v34 }
 0x4c7   : > { %v1085_v43 = vadd.f32 %v3615_v55, %v1072_v39 }
 0x4c8   : > { %v1094_v38 = vmax.f32 %v1086_v36, 0.0  ;;  %2945 = vmatprep.subr.bf16.mxu0 %v2944_v35 }
 0x4c9   : > { %v3123_v44 = vpop.eup %3122  ;;  %v1093_v45 = vmax.f32 %v1085_v43, 0.0  ;;  %2947 = vmatpush3.bf16.msra.mxu0 %v2944_v35 }
 0x4ca   : > { %v3125_v46 = vpop.eup %3124  ;;  %v1059_v40 = vmul.f32 %v3123_v44, %v3602_v32  ;;  %v1494_v44 = vld [vmem:[#allocation2 + $0x290] sm:$0xff] }
 0x4cb   : > { %2706 = vmatprep.mubr.f32.mxu1 %v1093_v45  ;;  %v1058_v41 = vmul.f32 %v3125_v46, %v3602_v32  ;;  %v1495_v45 = vld [vmem:[#allocation2 + $0x298] sm:$0xff] }
 0x4cc   : > { %2707 = vmatmul.mubr.f32.gmra.mrb[12].mxu1 %v1094_v38  ;;  %v1075_v56 = vmul.f32 %v1067_v37, %v1059_v40  ;;  %v2948_v46 = vpack.c.bf16 %v1495_v45, %v1494_v44 }
 0x4cd   : > { %v1074_v48 = vmul.f32 %v1066_v30, %v1058_v41  ;;  %v1496_v30 = vld [vmem:[#allocation2 + $0x2a0] sm:$0xff]  ;;  %v1497_v41 = vld [vmem:[#allocation2 + $0x2a8] sm:$0xff] }
 0x4ce   : > { %v1088_v42 = vadd.f32 %v3615_v55, %v1075_v56  ;;  %2949 = vmatprep.subr.bf16.mxu0 %v2948_v46  ;;  %v2952_v56 = vpack.c.bf16 %v1497_v41, %v1496_v30 }
 0x4cf   : > { %v1087_v51 = vadd.f32 %v3615_v55, %v1074_v48  ;;  %2951 = vmatpush3.bf16.msra.mxu0 %v2948_v46 }
 0x4d0   : > { %v1096_v52 = vmax.f32 %v1088_v42, 0.0  ;;  %2953 = vmatprep.subr.bf16.mxu0 %v2952_v56  ;;  %v1498_v42 = vld [vmem:[#allocation2 + $0x2b0] sm:$0xff] }
 0x4d1   : > { %v1095_v13 = vmax.f32 %v1087_v51, 0.0  ;;  %v1499_v51 = vld [vmem:[#allocation2 + $0x2b8] sm:$0xff] }
 0x4d3   : > { %2709 = vmatprep.mubr.f32.mxu1 %v1095_v13  ;;  %2955 = vmatpush3.bf16.msra.mxu0 %v2952_v56 }
 0x4d4   : > { %2710 = vmatmul.mubr.f32.gmra.mrb[14].mxu1 %v1096_v52  ;;  %v2956_v52 = vpack.c.bf16 %v1499_v51, %v1498_v42 }
 0x4d6   : > { %2957 = vmatprep.subr.bf16.mxu0 %v2956_v52 }
 0x4d7   : > { %2959 = vmatpush3.bf16.msra.mxu0 %v2956_v52 }
 0x58f   : > { %v2702_v32 = vpop.f32.mrb[8].mxu1 }
 0x590   : > { %v1191_v54 = vadd.f32 %v2702_v32, %v2395_v49  ;;  %v1185_v55 = vpop.f32.mrb[9].mxu1 }
 0x591   : > { %v1186_v57 = vadd.f32 %v2395_v49, %v1185_v55  ;;  %v1500_v55 = vld [vmem:[#allocation2 + $0x2c0] sm:$0xff] }
 0x592   : > { %1226 = vst.msk [vmem:[%s3648_s22 + $0x8] sm:$0xff] %vm1224_vm1, %v1191_v54  ;;  %1242 = vperm.xlu1 %3063, %v1191_v54  }
 0x593   : > { %1225 = vst.msk [vmem:[%s3648_s22] sm:$0xff] %vm1224_vm1, %v1186_v57  ;;  %1237 = vperm.xlu0 %3065, %v1186_v57  }
 0x596   : > { %3064 = vset.pattern.permute.xlu1 %v3250_v58 }
 0x597   : > { %1293 = vperm.xlu1 %3064, %v1191_v54   ;;  %v2705_v50 = vpop.f32.mrb[10].mxu1  ;;  %3073 = vset.pattern.permute.xlu0 %v3250_v58 }
 0x598   : > { %v1201_v16 = vadd.f32 %v2705_v50, %v2395_v49  ;;  %v1195_v59 = vpop.f32.mrb[11].mxu1 }
 0x599   : > { %v1196_v60 = vadd.f32 %v2395_v49, %v1195_v59 }
 0x59a   : > { %1228 = vst.msk [vmem:[%s3648_s22 + $0x18] sm:$0xff] %vm1224_vm1, %v1201_v16 }
 0x59b   : > { %1227 = vst.msk [vmem:[%s3648_s22 + $0x10] sm:$0xff] %vm1224_vm1, %v1196_v60  ;;  %1289 = vperm.xlu1 %3064, %v1186_v57   ;;  %v1501_v57 = vld [vmem:[#allocation2 + $0x2c8] sm:$0xff] }
 0x59f   : > { %3066 = vset.pattern.permute.xlu1 %v3249_v47  ;;  %v2708_v15 = vpop.f32.mrb[12].mxu1 }
 0x5a0   : > { %v1211_v0 = vadd.f32 %v2708_v15, %v2395_v49  ;;  %1252 = vperm.xlu1 %3066, %v1201_v16   ;;  %v1205_v1 = vpop.f32.mrb[13].mxu1 }
 0x5a1   : > { %v1206_v4 = vadd.f32 %v2395_v49, %v1205_v1  ;;  %v1503_v1 = vld [vmem:[#allocation2 + $0x2d8] sm:$0xff] }
 0x5a2   : > { %1230 = vst.msk [vmem:[%s3648_s22 + $0x28] sm:$0xff] %vm1224_vm1, %v1211_v0 }
 0x5a3   : > { %1229 = vst.msk [vmem:[%s3648_s22 + $0x20] sm:$0xff] %vm1224_vm1, %v1206_v4  ;;  %1305 = vperm.xlu0 %3073, %v1206_v4  }
 0x5a4   : > { %3067 = vset.pattern.permute.xlu1 %v3250_v58 }
 0x5a5   : > { %1301 = vperm.xlu1 %3067, %v1201_v16  }
 0x5a7   : > { %v2711_v29 = vpop.f32.mrb[14].mxu1  ;;  %3074 = vset.pattern.permute.xlu0 %v3249_v47 }
 0x5a8   : > { %v1221_v5 = vadd.f32 %v2711_v29, %v2395_v49  ;;  %v1215_v6 = vpop.f32.mrb[15].mxu1 }
 0x5a9   : > { %v1216_v7 = vadd.f32 %v2395_v49, %v1215_v6  ;;  %3068 = vset.pattern.permute.xlu1 %v3249_v47 }
 0x5aa   : > { %1232 = vst.msk [vmem:[%s3648_s22 + $0x38] sm:$0xff] %vm1224_vm1, %v1221_v5  ;;  %1247 = vperm.xlu1 %3068, %v1196_v60  }
 0x5ab   : > { %1231 = vst.msk [vmem:[%s3648_s22 + $0x30] sm:$0xff] %vm1224_vm1, %v1216_v7  ;;  %1267 = vperm.xlu0 %3074, %v1216_v7  }
 0x5ae   : > { %3069 = vset.pattern.permute.xlu1 %v3250_v58 }
 0x5af   : > { %1297 = vperm.xlu1 %3069, %v1196_v60   ;;  %3077 = vset.pattern.permute.xlu0 %v3250_v58 }
 0x5b0   : > { %1317 = vperm.xlu0 %3077, %v1221_v5  }
 0x5b3   : > { %3070 = vset.pattern.permute.xlu1 %v3249_v47 }
 0x5b4   : > { %1262 = vperm.xlu1 %3070, %v1211_v0  }
 0x5b8   : > { %3071 = vset.pattern.permute.xlu1 %v3250_v58 }
 0x5b9   : > { %1309 = vperm.xlu1 %3071, %v1211_v0   ;;  %v1502_v0 = vld [vmem:[#allocation2 + $0x2d0] sm:$0xff] }
 0x5ba   : > { %v2964_v29 = vpack.c.bf16 %v1503_v1, %v1502_v0 }
 0x5bd   : > { %3072 = vset.pattern.permute.xlu1 %v3249_v47 }
 0x5be   : > { %1257 = vperm.xlu1 %3072, %v1206_v4  }
 0x5c2   : > { %3075 = vset.pattern.permute.xlu1 %v3250_v58  ;;  %v2960_v58 = vpack.c.bf16 %v1501_v57, %v1500_v55 }
 0x5c3   : > { %1313 = vperm.xlu1 %3075, %v1216_v7  }
 0x5c4   : > { %2961 = vmatprep.subr.bf16.mxu0 %v2960_v58 }
 0x5c5   : > { %2963 = vmatpush3.bf16.msra.mxu0 %v2960_v58 }
 0x5c6   : > { %2965 = vmatprep.subr.bf16.mxu0 %v2964_v29 }
 0x5c7   : > { %3076 = vset.pattern.permute.xlu1 %v3249_v47 }
 0x5c8   : > { %1272 = vperm.xlu1 %3076, %v1221_v5  }
 0x5c9   : > { %2967 = vmatpush3.bf16.msra.mxu0 %v2964_v29 }
 0x611   : > { %v1243_v8 = vpop.permute.xlu1 %1242 }
 0x612   : > { %v1280_v63 = vmul.f32 %v3666_v61, %v1243_v8  ;;  %v1238_v14 = vpop.permute.xlu0 %1237 }
 0x613   : > { %v1279_v18 = vmul.f32 %v3666_v61, %v1238_v14 }
 0x616   : > { %v1294_v11 = vpop.permute.xlu1 %1293 }
 0x617   : > { %v1325_v2 = vmul.f32 %v3668_v62, %v1294_v11  ;;  %v1504_v11 = vld [vmem:[#allocation2 + $0x2e0] sm:$0xff] }
 0x619   : > { %v1333_v19 = vadd.f32 %v1325_v2, %v1280_v63  ;;  %v1505_v63 = vld [vmem:[#allocation2 + $0x2e8] sm:$0xff] }
 0x61a   : > { %v1290_v10 = vpop.permute.xlu1 %1289  ;;  %v2968_v14 = vpack.c.bf16 %v1505_v63, %v1504_v11 }
 0x61b   : > { %v1324_v9 = vmul.f32 %v3668_v62, %v1290_v10  ;;  %v3680_v21 = vadd.f32 %v3675_v17, %v1333_v19 }
 0x61c   : > { %2969 = vmatprep.subr.bf16.mxu0 %v2968_v14 }
 0x61d   : > { %v1332_v27 = vadd.f32 %v1324_v9, %v1279_v18  ;;  %1355 = vadd.xlane.f32.xlu0 %v3680_v21  ;;  %v1378_v12 = vmul.f32 %v3680_v21, %v3680_v21  ;;  %2971 = vmatpush3.bf16.msra.mxu0 %v2968_v14 }
 0x61f   : > { %v1253_v20 = vpop.permute.xlu1 %1252  ;;  %v3686_v3 = vadd.f32 %v3675_v17, %v1332_v27  ;;  %v1506_v27 = vld [vmem:[#allocation2 + $0x2f0] sm:$0xff] }
 0x620   : > { %v1282_v25 = vmul.f32 %v3666_v61, %v1253_v20  ;;  %v1507_v20 = vld [vmem:[#allocation2 + $0x2f8] sm:$0xff] }
 0x621   : > { %1387 = vadd.xlane.f32.xlu0 %v1378_v12  ;;  %1353 = vadd.xlane.f32.xlu1 %v3686_v3  ;;  %v1377_v24 = vmul.f32 %v3686_v3, %v3686_v3 }
 0x622   : > { %v1306_v32 = vpop.permute.xlu0 %1305 }
 0x623   : > { %v1328_v59 = vmul.f32 %v3668_v62, %v1306_v32 }
 0x624   : > { %v1302_v23 = vpop.permute.xlu1 %1301 }
 0x625   : > { %v1327_v26 = vmul.f32 %v3668_v62, %v1302_v23  ;;  %1385 = vadd.xlane.f32.xlu1 %v1377_v24  ;;  %v2972_v23 = vpack.c.bf16 %v1507_v20, %v1506_v27 }
 0x627   : > { %v1335_v31 = vadd.f32 %v1327_v26, %v1282_v25  ;;  %2973 = vmatprep.subr.bf16.mxu0 %v2972_v23 }
 0x628   : > { %2975 = vmatpush3.bf16.msra.mxu0 %v2972_v23 }
 0x629   : > { %v1248_v33 = vpop.permute.xlu1 %1247  ;;  %v3694_v22 = vadd.f32 %v3675_v17, %v1335_v31 }
 0x62a   : > { %v1281_v36 = vmul.f32 %v3666_v61, %v1248_v33  ;;  %v1268_v15 = vpop.permute.xlu0 %1267 }
 0x62b   : > { %1359 = vadd.xlane.f32.xlu0 %v3694_v22  ;;  %v1380_v28 = vmul.f32 %v3694_v22, %v3694_v22  ;;  %v1285_v2 = vmul.f32 %v3666_v61, %v1268_v15 }
 0x62e   : > { %v1298_v39 = vpop.permute.xlu1 %1297 }
 0x62f   : > { %v1326_v43 = vmul.f32 %v3668_v62, %v1298_v39  ;;  %1391 = vadd.xlane.f32.xlu0 %v1380_v28  ;;  %v1318_v19 = vpop.permute.xlu0 %1317 }
 0x630   : > { %v1331_v12 = vmul.f32 %v3668_v62, %v1318_v19 }
 0x631   : > { %v1334_v37 = vadd.f32 %v1326_v43, %v1281_v36 }
 0x633   : > { %v1263_v38 = vpop.permute.xlu1 %1262  ;;  %v3702_v40 = vadd.f32 %v3675_v17, %v1334_v37 }
 0x634   : > { %v1284_v47 = vmul.f32 %v3666_v61, %v1263_v38 }
 0x635   : > { %1357 = vadd.xlane.f32.xlu1 %v3702_v40  ;;  %v1379_v48 = vmul.f32 %v3702_v40, %v3702_v40 }
 0x638   : > { %v1310_v13 = vpop.permute.xlu1 %1309 }
 0x639   : > { %v1329_v49 = vmul.f32 %v3668_v62, %v1310_v13  ;;  %1389 = vadd.xlane.f32.xlu1 %v1379_v48  ;;  %v3742_v48 = vld [vmem:[%s3994_s3 + $0x3] ss:$0 sm:$0xff] }
 0x63b   : > { %v1337_v54 = vadd.f32 %v1329_v49, %v1284_v47 }
 0x63d   : > { %v1258_v50 = vpop.permute.xlu1 %1257  ;;  %v3710_v16 = vadd.f32 %v3675_v17, %v1337_v54 }
 0x63e   : > { %v1283_v60 = vmul.f32 %v3666_v61, %v1258_v50 }
 0x63f   : > { %1363 = vadd.xlane.f32.xlu0 %v3710_v16  ;;  %v1382_v5 = vmul.f32 %v3710_v16, %v3710_v16 }
 0x640   : > { %v1336_v4 = vadd.f32 %v1328_v59, %v1283_v60  ;;  %v3751_v60 = vld [vmem:[%s3995_s4 + $0x3] ss:$0 sm:$0xff] }
 0x642   : > { %v1314_v6 = vpop.permute.xlu1 %1313  ;;  %v3718_v7 = vadd.f32 %v3675_v17, %v1336_v4 }
 0x643   : > { %v1330_v8 = vmul.f32 %v3668_v62, %v1314_v6  ;;  %1395 = vadd.xlane.f32.xlu0 %v1382_v5 }
 0x644   : > { %1361 = vadd.xlane.f32.xlu1 %v3718_v7  ;;  %v1381_v18 = vmul.f32 %v3718_v7, %v3718_v7 }
 0x645   : > { %v1338_v10 = vadd.f32 %v1330_v8, %v1285_v2 }
 0x647   : > { %v1273_v9 = vpop.permute.xlu1 %1272  ;;  %v3728_v26 = vadd.f32 %v3675_v17, %v1338_v10 }
 0x648   : > { %v1286_v24 = vmul.f32 %v3666_v61, %v1273_v9  ;;  %1393 = vadd.xlane.f32.xlu1 %v1381_v18 }
 0x649   : > { %v1383_v62 = vmul.f32 %v3728_v26, %v3728_v26 }
 0x64a   : > { %v1339_v25 = vadd.f32 %v1331_v12, %v1286_v24 }
 0x64c   : > { %1365 = vadd.xlane.f32.xlu1 %v3728_v26  ;;  %v3732_v31 = vadd.f32 %v3675_v17, %v1339_v25 }
 0x64e   : > { %1367 = vadd.xlane.f32.xlu0 %v3732_v31  ;;  %v1384_v61 = vmul.f32 %v3732_v31, %v3732_v31 }
 0x650   : > { %1397 = vadd.xlane.f32.xlu1 %v1383_v62 }
 0x652   : > { %1399 = vadd.xlane.f32.xlu0 %v1384_v61 }
 0x6aa   : > { %v1356_v33 = vpop.xlane.xlu0 %1355 }
 0x6ab   : > { %v1370_v34 = vmul.f32 0.020833334, %v1356_v33 }
 0x6ad   : > { %v1410_v28 = vmul.f32 %v1370_v34, %v1370_v34  ;;  %v1455_v49 = vsub.f32 %v3680_v21, %v1370_v34 }
 0x6ae   : > { %v1388_v53 = vpop.xlane.xlu0 %1387  ;;  %v1354_v35 = vpop.xlane.xlu1 %1353 }
 0x6af   : > { %v1402_v39 = vmul.f32 0.020833334, %v1388_v53  ;;  %v1369_v36 = vmul.f32 0.020833334, %v1354_v35 }
 0x6b1   : > { %v1418_v43 = vsub.f32 %v1402_v39, %v1410_v28  ;;  %v1409_v45 = vmul.f32 %v1369_v36, %v1369_v36  ;;  %v1454_v50 = vsub.f32 %v3686_v3, %v1369_v36 }
 0x6b2   : > { %v1386_v17 = vpop.xlane.xlu1 %1385 }
 0x6b3   : > { %v1426_v44 = vadd.f32 1e-05, %v1418_v43  ;;  %v1401_v46 = vmul.f32 0.020833334, %v1386_v17 }
 0x6b5   : > { %3126 = vrsqrt.f32 %v1426_v44  ;;  %v1417_v37 = vsub.f32 %v1401_v46, %v1409_v45 }
 0x6b7   : > { %v1425_v38 = vadd.f32 1e-05, %v1417_v37 }
 0x6b8   : > { %v1360_v30 = vpop.xlane.xlu0 %1359 }
 0x6b9   : > { %3128 = vrsqrt.f32 %v1425_v38  ;;  %v1372_v41 = vmul.f32 0.020833334, %v1360_v30 }
 0x6bb   : > { %v1412_v42 = vmul.f32 %v1372_v41, %v1372_v41  ;;  %v1457_v23 = vsub.f32 %v3694_v22, %v1372_v41 }
 0x6bc   : > { %v1392_v56 = vpop.xlane.xlu0 %1391 }
 0x6bd   : > { %v1404_v51 = vmul.f32 0.020833334, %v1392_v56 }
 0x6bf   : > { %v3127_v13 = vpop.eup %3126  ;;  %v1420_v52 = vsub.f32 %v1404_v51, %v1412_v42 }
 0x6c0   : > { %v1447_v47 = vmul.f32 %v3127_v13, %v3742_v48 }
 0x6c1   : > { %v1428_v55 = vadd.f32 1e-05, %v1420_v52 }
 0x6c2   : > { %v1358_v32 = vpop.xlane.xlu1 %1357  ;;  %v1463_v58 = vmul.f32 %v1455_v49, %v1447_v47 }
 0x6c3   : > { %v3129_v54 = vpop.eup %3128  ;;  %v1371_v57 = vmul.f32 0.020833334, %v1358_v32  ;;  %3130 = vrsqrt.f32 %v1428_v55 }
 0x6c4   : > { %v1446_v59 = vmul.f32 %v3129_v54, %v3742_v48  ;;  %v1476_v21 = vadd.f32 %v3751_v60, %v1463_v58 }
 0x6c5   : > { %v1411_v1 = vmul.f32 %v1371_v57, %v1371_v57  ;;  %v1456_v33 = vsub.f32 %v3702_v40, %v1371_v57 }
 0x6c6   : > { %v1390_v15 = vpop.xlane.xlu1 %1389  ;;  %v1462_v0 = vmul.f32 %v1454_v50, %v1446_v59  ;;  %v1484_v3 = vmax.f32 %v1476_v21, 0.0 }
 0x6c7   : > { %v1403_v4 = vmul.f32 0.020833334, %v1390_v15 }
 0x6c8   : > { %v1475_v29 = vadd.f32 %v3751_v60, %v1462_v0 }
 0x6c9   : > { %v1419_v5 = vsub.f32 %v1403_v4, %v1411_v1 }
 0x6ca   : > { %v1483_v6 = vmax.f32 %v1475_v29, 0.0 }
 0x6cb   : > { %v1427_v8 = vadd.f32 1e-05, %v1419_v5 }
 0x6cc   : > { %v1364_v11 = vpop.xlane.xlu0 %1363  ;;  %2744 = vmatprep.mubr.f32.mxu0 %v1483_v6 }
 0x6cd   : > { %3132 = vrsqrt.f32 %v1427_v8  ;;  %v1374_v63 = vmul.f32 0.020833334, %v1364_v11  ;;  %2745 = vmatmul.mubr.f32.vlgmr.msra.gmra.mrb[16].mxu0 %v1484_v3  ;;  %v3131_v14 = vpop.eup %3130 }
 0x6ce   : > { %v1449_v20 = vmul.f32 %v3131_v14, %v3742_v48 }
 0x6cf   : > { %v1414_v19 = vmul.f32 %v1374_v63, %v1374_v63  ;;  %v1459_v32 = vsub.f32 %v3710_v16, %v1374_v63 }
 0x6d0   : > { %v1396_v2 = vpop.xlane.xlu0 %1395  ;;  %v1465_v35 = vmul.f32 %v1457_v23, %v1449_v20 }
 0x6d1   : > { %v1406_v10 = vmul.f32 0.020833334, %v1396_v2  ;;  %v1362_v18 = vpop.xlane.xlu1 %1361 }
 0x6d2   : > { %v1373_v9 = vmul.f32 0.020833334, %v1362_v18  ;;  %v1478_v45 = vadd.f32 %v3751_v60, %v1465_v35 }
 0x6d3   : > { %v1422_v27 = vsub.f32 %v1406_v10, %v1414_v19  ;;  %v1758_v19 = vld [vmem:[#allocation2 + $0x308] sm:$0xff] }
 0x6d4   : > { %v1413_v25 = vmul.f32 %v1373_v9, %v1373_v9  ;;  %v1486_v51 = vmax.f32 %v1478_v45, 0.0  ;;  %v1458_v58 = vsub.f32 %v3718_v7, %v1373_v9  ;;  %v1766_v45 = vld [vmem:[#allocation2 + $0x348] sm:$0xff] }
 0x6d5   : > { %v1430_v12 = vadd.f32 1e-05, %v1422_v27  ;;  %v1394_v24 = vpop.xlane.xlu1 %1393 }
 0x6d6   : > { %v1405_v62 = vmul.f32 0.020833334, %v1394_v24  ;;  %v1760_v24 = vld [vmem:[#allocation2 + $0x318] sm:$0xff] }
 0x6d7   : > { %v3133_v61 = vpop.eup %3132  ;;  %3134 = vrsqrt.f32 %v1430_v12  ;;  %v1759_v12 = vld [vmem:[#allocation2 + $0x310] sm:$0xff] }
 0x6d8   : > { %v1421_v34 = vsub.f32 %v1405_v62, %v1413_v25  ;;  %v1448_v53 = vmul.f32 %v3133_v61, %v3742_v48  ;;  %v2980_v23 = vpack.c.bf16 %v1760_v24, %v1759_v12 }
 0x6d9   : > { %v1366_v28 = vpop.xlane.xlu1 %1365 }
 0x6da   : > { %v1429_v39 = vadd.f32 1e-05, %v1421_v34  ;;  %v1375_v36 = vmul.f32 0.020833334, %v1366_v28  ;;  %v1464_v43 = vmul.f32 %v1456_v33, %v1448_v53  ;;  %v1761_v33 = vld [vmem:[#allocation2 + $0x320] sm:$0xff]  ;;  %v1762_v34 = vld [vmem:[#allocation2 + $0x328] sm:$0xff] }
 0x6db   : > { %v1368_v17 = vpop.xlane.xlu0 %1367  ;;  %v2984_v35 = vpack.c.bf16 %v1762_v34, %v1761_v33 }
 0x6dc   : > { %3136 = vrsqrt.f32 %v1429_v39  ;;  %v1376_v44 = vmul.f32 0.020833334, %v1368_v17  ;;  %v1477_v46 = vadd.f32 %v3751_v60, %v1464_v43  ;;  %v1415_v37 = vmul.f32 %v1375_v36, %v1375_v36  ;;  %v1763_v39 = vld [vmem:[#allocation2 + $0x330] sm:$0xff] }
 0x6dd   : > { %v1398_v22 = vpop.xlane.xlu1 %1397  ;;  %v1460_v29 = vsub.f32 %v3728_v26, %v1375_v36  ;;  %v1757_v26 = vld [vmem:[#allocation2 + $0x300] sm:$0xff]  ;;  %v1764_v36 = vld [vmem:[#allocation2 + $0x338] sm:$0xff] }
 0x6de   : > { %v1407_v38 = vmul.f32 0.020833334, %v1398_v22  ;;  %v1485_v40 = vmax.f32 %v1477_v46, 0.0  ;;  %v1416_v41 = vmul.f32 %v1376_v44, %v1376_v44  ;;  %v1461_v6 = vsub.f32 %v3732_v31, %v1376_v44  ;;  %v3776_v31 = vld [vmem:[%s3993_s2 + $0x5] ss:$0 sm:$0xff]  ;;  %v1767_v46 = vld [vmem:[#allocation2 + $0x350] sm:$0xff] }
 0x6df   : > { %v1400_v30 = vpop.xlane.xlu0 %1399  ;;  %v2976_v10 = vpack.c.bf16 %v1758_v19, %v1757_v26  ;;  %v2988_v17 = vpack.c.bf16 %v1764_v36, %v1763_v39  ;;  %v1765_v44 = vld [vmem:[#allocation2 + $0x340] sm:$0xff] }
 0x6e0   : > { %v1423_v56 = vsub.f32 %v1407_v38, %v1415_v37  ;;  %v1408_v42 = vmul.f32 0.020833334, %v1400_v30  ;;  %2747 = vmatprep.mubr.f32.mxu0 %v1485_v40  ;;  %v2992_v22 = vpack.c.bf16 %v1766_v45, %v1765_v44  ;;  %v1768_v37 = vld [vmem:[#allocation2 + $0x358] sm:$0xff] }
 0x6e1   : > { %v3135_v13 = vpop.eup %3134  ;;  %2748 = vmatmul.mubr.f32.gmra.mrb[18].mxu0 %v1486_v51  ;;  %2977 = vmatprep.subr.bf16.mxu1 %v2976_v10  ;;  %v2996_v30 = vpack.c.bf16 %v1768_v37, %v1767_v46  ;;  %v1770_v51 = vld [vmem:[#allocation2 + $0x368] sm:$0xff] }
 0x6e2   : > { %v1431_v52 = vadd.f32 1e-05, %v1423_v56  ;;  %v1424_v47 = vsub.f32 %v1408_v42, %v1416_v41  ;;  %v1451_v49 = vmul.f32 %v3135_v13, %v3742_v48  ;;  %2979 = vmatpush3.bf16.msra.mxu1 %v2976_v10  ;;  %v1769_v42 = vld [vmem:[#allocation2 + $0x360] sm:$0xff] }
 0x6e3   : > { %2981 = vmatprep.subr.bf16.mxu1 %v2980_v23  ;;  %v3000_v13 = vpack.c.bf16 %v1770_v51, %v1769_v42 }
 0x6e4   : > { %3138 = vrsqrt.f32 %v1431_v52  ;;  %v1432_v54 = vadd.f32 1e-05, %v1424_v47  ;;  %v1467_v57 = vmul.f32 %v1459_v32, %v1451_v49  ;;  %v1771_v49 = vld [vmem:[#allocation2 + $0x370] sm:$0xff]  ;;  %v1772_v32 = vld [vmem:[#allocation2 + $0x378] sm:$0xff] }
 0x6e6   : > { %v3137_v55 = vpop.eup %3136  ;;  %3140 = vrsqrt.f32 %v1432_v54  ;;  %v1480_v15 = vadd.f32 %v3751_v60, %v1467_v57  ;;  %2983 = vmatpush3.bf16.msra.mxu1 %v2980_v23  ;;  %v3004_v54 = vpack.c.bf16 %v1772_v32, %v1771_v49  ;;  %v3838_v23 = vld [vmem:[%s3995_s4 + $0x4] ss:$0 sm:$0xff] }
 0x6e7   : > { %v1450_v50 = vmul.f32 %v3137_v55, %v3742_v48  ;;  %2985 = vmatprep.subr.bf16.mxu1 %v2984_v35 }
 0x6e8   : > { %v1488_v21 = vmax.f32 %v1480_v15, 0.0 }
 0x6e9   : > { %v1466_v59 = vmul.f32 %v1458_v58, %v1450_v50 }
 0x6ea   : > { %2987 = vmatpush3.bf16.msra.mxu1 %v2984_v35 }
 0x6eb   : > { %v1479_v0 = vadd.f32 %v3751_v60, %v1466_v59  ;;  %2989 = vmatprep.subr.bf16.mxu1 %v2988_v17 }
 0x6ed   : > { %v1487_v1 = vmax.f32 %v1479_v0, 0.0 }
 0x6ee   : > { %v3139_v4 = vpop.eup %3138  ;;  %2991 = vmatpush3.bf16.msra.mxu1 %v2988_v17 }
 0x6ef   : > { %2750 = vmatprep.mubr.f32.mxu0 %v1487_v1  ;;  %v1452_v16 = vmul.f32 %v3139_v4, %v3742_v48  ;;  %2993 = vmatprep.subr.bf16.mxu1 %v2992_v22 }
 0x6f0   : > { %v3141_v5 = vpop.eup %3140  ;;  %2751 = vmatmul.mubr.f32.gmra.mrb[20].mxu0 %v1488_v21 }
 0x6f1   : > { %v1468_v7 = vmul.f32 %v1460_v29, %v1452_v16  ;;  %v1453_v8 = vmul.f32 %v3141_v5, %v3742_v48 }
 0x6f2   : > { %2995 = vmatpush3.bf16.msra.mxu1 %v2992_v22 }
 0x6f3   : > { %v1481_v3 = vadd.f32 %v3751_v60, %v1468_v7  ;;  %v1469_v11 = vmul.f32 %v1461_v6, %v1453_v8  ;;  %2997 = vmatprep.subr.bf16.mxu1 %v2996_v30 }
 0x6f5   : > { %v1489_v63 = vmax.f32 %v1481_v3, 0.0  ;;  %v1482_v2 = vadd.f32 %v3751_v60, %v1469_v11 }
 0x6f6   : > { %2999 = vmatpush3.bf16.msra.mxu1 %v2996_v30 }
 0x6f7   : > { %2753 = vmatprep.mubr.f32.mxu0 %v1489_v63  ;;  %v1490_v14 = vmax.f32 %v1482_v2, 0.0  ;;  %3001 = vmatprep.subr.bf16.mxu1 %v3000_v13 }
 0x6f9   : > { %2754 = vmatmul.mubr.f32.gmra.mrb[22].mxu0 %v1490_v14  ;;  %v3829_v14 = vld [vmem:[%s3994_s3 + $0x4] ss:$0 sm:$0xff] }
 0x6fa   : > { %3003 = vmatpush3.bf16.msra.mxu1 %v3000_v13 }
 0x6fb   : > { %3005 = vmatprep.subr.bf16.mxu1 %v3004_v54 }
 0x6fe   : > { %3007 = vmatpush3.bf16.msra.mxu1 %v3004_v54 }
 0x7a0   : > { %v2746_v48 = vpop.f32.mrb[16].mxu0 }
 0x7a1   : > { %v3779_v18 = vadd.f32 %v2746_v48, %v3776_v31  ;;  %v1579_v9 = vpop.f32.mrb[17].mxu0 }
 0x7a2   : > { %v3782_v60 = vadd.f32 %v3776_v31, %v1579_v9 }
 0x7a3   : > { %1620 = vadd.xlane.f32.xlu0 %v3779_v18  ;;  %v1643_v27 = vmul.f32 %v3779_v18, %v3779_v18 }
 0x7a4   : > { %1618 = vadd.xlane.f32.xlu1 %v3782_v60  ;;  %v1642_v20 = vmul.f32 %v3782_v60, %v3782_v60 }
 0x7a7   : > { %1652 = vadd.xlane.f32.xlu0 %v1643_v27 }
 0x7a8   : > { %1650 = vadd.xlane.f32.xlu1 %v1642_v20 }
 0x7b4   : > { %v2749_v25 = vpop.f32.mrb[18].mxu0 }
 0x7b5   : > { %v3791_v62 = vadd.f32 %v2749_v25, %v3776_v31  ;;  %v1589_v61 = vpop.f32.mrb[19].mxu0 }
 0x7b6   : > { %v3794_v53 = vadd.f32 %v3776_v31, %v1589_v61 }
 0x7b7   : > { %1624 = vadd.xlane.f32.xlu0 %v3791_v62  ;;  %v1645_v28 = vmul.f32 %v3791_v62, %v3791_v62 }
 0x7b8   : > { %1622 = vadd.xlane.f32.xlu1 %v3794_v53  ;;  %v1644_v43 = vmul.f32 %v3794_v53, %v3794_v53 }
 0x7bb   : > { %1656 = vadd.xlane.f32.xlu0 %v1645_v28 }
 0x7bc   : > { %1654 = vadd.xlane.f32.xlu1 %v1644_v43 }
 0x7c3   : > { %v2752_v38 = vpop.f32.mrb[20].mxu0 }
 0x7c4   : > { %v3803_v40 = vadd.f32 %v2752_v38, %v3776_v31  ;;  %v1599_v41 = vpop.f32.mrb[21].mxu0 }
 0x7c5   : > { %v3806_v56 = vadd.f32 %v3776_v31, %v1599_v41 }
 0x7c6   : > { %1628 = vadd.xlane.f32.xlu0 %v3803_v40  ;;  %v1647_v52 = vmul.f32 %v3803_v40, %v3803_v40 }
 0x7c7   : > { %1626 = vadd.xlane.f32.xlu1 %v3806_v56  ;;  %v1646_v47 = vmul.f32 %v3806_v56, %v3806_v56 }
 0x7ca   : > { %1660 = vadd.xlane.f32.xlu0 %v1647_v52 }
 0x7cb   : > { %1658 = vadd.xlane.f32.xlu1 %v1646_v47 }
 0x7cc   : > { %v2755_v55 = vpop.f32.mrb[22].mxu0 }
 0x7cd   : > { %v3815_v57 = vadd.f32 %v2755_v55, %v3776_v31  ;;  %v1609_v58 = vpop.f32.mrb[23].mxu0 }
 0x7ce   : > { %v3818_v50 = vadd.f32 %v3776_v31, %v1609_v58 }
 0x7cf   : > { %1632 = vadd.xlane.f32.xlu0 %v3815_v57  ;;  %v1649_v59 = vmul.f32 %v3815_v57, %v3815_v57 }
 0x7d0   : > { %1630 = vadd.xlane.f32.xlu1 %v3818_v50  ;;  %v1648_v15 = vmul.f32 %v3818_v50, %v3818_v50 }
 0x7d3   : > { %1664 = vadd.xlane.f32.xlu0 %v1649_v59 }
 0x7d4   : > { %1662 = vadd.xlane.f32.xlu1 %v1648_v15 }
 0x830   : > { %v1621_v0 = vpop.xlane.xlu0 %1620 }
 0x831   : > { %v1635_v1 = vmul.f32 0.015625, %v1621_v0  ;;  %v1619_v4 = vpop.xlane.xlu1 %1618 }
 0x832   : > { %v1634_v21 = vmul.f32 0.015625, %v1619_v4 }
 0x833   : > { %v1675_v16 = vmul.f32 %v1635_v1, %v1635_v1  ;;  %v1720_v31 = vsub.f32 %v3779_v18, %v1635_v1 }
 0x834   : > { %v1653_v29 = vpop.xlane.xlu0 %1652  ;;  %v1674_v7 = vmul.f32 %v1634_v21, %v1634_v21  ;;  %v1719_v20 = vsub.f32 %v3782_v60, %v1634_v21 }
 0x835   : > { %v1667_v5 = vmul.f32 0.015625, %v1653_v29  ;;  %v1651_v6 = vpop.xlane.xlu1 %1650 }
 0x836   : > { %v1666_v8 = vmul.f32 0.015625, %v1651_v6 }
 0x837   : > { %v1683_v3 = vsub.f32 %v1667_v5, %v1675_v16 }
 0x838   : > { %v1682_v11 = vsub.f32 %v1666_v8, %v1674_v7 }
 0x839   : > { %v1691_v63 = vadd.f32 1e-05, %v1683_v3 }
 0x83a   : > { %v1690_v2 = vadd.f32 1e-05, %v1682_v11 }
 0x83b   : > { %3142 = vrsqrt.f32 %v1691_v63 }
 0x83c   : > { %3144 = vrsqrt.f32 %v1690_v2 }
 0x844   : > { %v1625_v19 = vpop.xlane.xlu0 %1624 }
 0x845   : > { %v3143_v26 = vpop.eup %3142  ;;  %v1637_v9 = vmul.f32 0.015625, %v1625_v19  ;;  %v1623_v27 = vpop.xlane.xlu1 %1622 }
 0x846   : > { %v3145_v10 = vpop.eup %3144  ;;  %v1712_v48 = vmul.f32 %v3143_v26, %v3829_v14  ;;  %v1636_v12 = vmul.f32 0.015625, %v1623_v27 }
 0x847   : > { %v1711_v24 = vmul.f32 %v3145_v10, %v3829_v14  ;;  %v1677_v34 = vmul.f32 %v1637_v9, %v1637_v9  ;;  %v1722_v58 = vsub.f32 %v3791_v62, %v1637_v9 }
 0x848   : > { %v1728_v25 = vmul.f32 %v1720_v31, %v1712_v48  ;;  %v1657_v61 = vpop.xlane.xlu0 %1656  ;;  %v1676_v39 = vmul.f32 %v1636_v12, %v1636_v12  ;;  %v1721_v0 = vsub.f32 %v3794_v53, %v1636_v12 }
 0x849   : > { %v1727_v33 = vmul.f32 %v1719_v20, %v1711_v24  ;;  %v1669_v35 = vmul.f32 0.015625, %v1657_v61  ;;  %v1655_v18 = vpop.xlane.xlu1 %1654 }
 0x84a   : > { %v1741_v28 = vadd.f32 %v3838_v23, %v1728_v25  ;;  %v1668_v36 = vmul.f32 0.015625, %v1655_v18 }
 0x84b   : > { %v1740_v60 = vadd.f32 %v3838_v23, %v1727_v33  ;;  %v1685_v43 = vsub.f32 %v1669_v35, %v1677_v34 }
 0x84c   : > { %v1684_v17 = vsub.f32 %v1668_v36, %v1676_v39  ;;  %v1749_v22 = vmax.f32 %v1741_v28, 0.0 }
 0x84d   : > { %v1748_v44 = vmax.f32 %v1740_v60, 0.0  ;;  %v1693_v45 = vadd.f32 1e-05, %v1685_v43 }
 0x84e   : > { %v1692_v46 = vadd.f32 1e-05, %v1684_v17 }
 0x84f   : > { %2788 = vmatprep.mubr.f32.mxu1 %v1748_v44  ;;  %3146 = vrsqrt.f32 %v1693_v45 }
 0x850   : > { %2789 = vmatmul.mubr.f32.vlgmr.msra.gmra.mrb[16].mxu1 %v1749_v22  ;;  %3148 = vrsqrt.f32 %v1692_v46 }
 0x853   : > { %v1629_v37 = vpop.xlane.xlu0 %1628 }
 0x854   : > { %v1639_v38 = vmul.f32 0.015625, %v1629_v37  ;;  %v1627_v30 = vpop.xlane.xlu1 %1626 }
 0x855   : > { %v1638_v41 = vmul.f32 0.015625, %v1627_v30 }
 0x856   : > { %v1679_v51 = vmul.f32 %v1639_v38, %v1639_v38  ;;  %v1724_v25 = vsub.f32 %v3803_v40, %v1639_v38 }
 0x857   : > { %v1661_v42 = vpop.xlane.xlu0 %1660  ;;  %v1678_v47 = vmul.f32 %v1638_v41, %v1638_v41  ;;  %v1723_v33 = vsub.f32 %v3806_v56, %v1638_v41 }
 0x858   : > { %v1671_v13 = vmul.f32 0.015625, %v1661_v42  ;;  %v1659_v52 = vpop.xlane.xlu1 %1658  ;;  %v2022_v42 = vld [vmem:[#allocation2 + $0x380] sm:$0xff] }
 0x859   : > { %v1670_v49 = vmul.f32 0.015625, %v1659_v52  ;;  %v3147_v32 = vpop.eup %3146 }
 0x85a   : > { %v1687_v54 = vsub.f32 %v1671_v13, %v1679_v51  ;;  %v3149_v55 = vpop.eup %3148  ;;  %v1714_v15 = vmul.f32 %v3147_v32, %v3829_v14  ;;  %v2024_v32 = vld [vmem:[#allocation2 + $0x390] sm:$0xff] }
 0x85b   : > { %v1686_v59 = vsub.f32 %v1670_v49, %v1678_v47  ;;  %v1713_v21 = vmul.f32 %v3149_v55, %v3829_v14 }
 0x85c   : > { %v1695_v1 = vadd.f32 1e-05, %v1687_v54  ;;  %v1633_v4 = vpop.xlane.xlu0 %1632  ;;  %v1730_v6 = vmul.f32 %v1722_v58, %v1714_v15  ;;  %v2025_v54 = vld [vmem:[#allocation2 + $0x398] sm:$0xff] }
 0x85d   : > { %v1694_v29 = vadd.f32 1e-05, %v1686_v59  ;;  %v1641_v16 = vmul.f32 0.015625, %v1633_v4  ;;  %v1631_v5 = vpop.xlane.xlu1 %1630  ;;  %v1729_v8 = vmul.f32 %v1721_v0, %v1713_v21  ;;  %v3012_v55 = vpack.c.bf16 %v2025_v54, %v2024_v32  ;;  %v2026_v0 = vld [vmem:[#allocation2 + $0x3a0] sm:$0xff] }
 0x85e   : > { %3150 = vrsqrt.f32 %v1695_v1  ;;  %v1640_v7 = vmul.f32 0.015625, %v1631_v5  ;;  %v1743_v3 = vadd.f32 %v3838_v23, %v1730_v6  ;;  %v2027_v1 = vld [vmem:[#allocation2 + $0x3a8] sm:$0xff]  ;;  %v2029_v5 = vld [vmem:[#allocation2 + $0x3b8] sm:$0xff] }
 0x85f   : > { %3152 = vrsqrt.f32 %v1694_v29  ;;  %v1742_v11 = vadd.f32 %v3838_v23, %v1729_v8  ;;  %v1681_v63 = vmul.f32 %v1641_v16, %v1641_v16  ;;  %v1726_v44 = vsub.f32 %v3815_v57, %v1641_v16  ;;  %v2023_v57 = vld [vmem:[#allocation2 + $0x388] sm:$0xff]  ;;  %v2028_v16 = vld [vmem:[#allocation2 + $0x3b0] sm:$0xff]  ;;  %v2030_v8 = vld [vmem:[#allocation2 + $0x3c0] sm:$0xff] }
 0x860   : > { %v1665_v62 = vpop.xlane.xlu0 %1664  ;;  %v1680_v26 = vmul.f32 %v1640_v7, %v1640_v7  ;;  %v1751_v48 = vmax.f32 %v1743_v3, 0.0  ;;  %v1725_v45 = vsub.f32 %v3818_v50, %v1640_v7  ;;  %v3008_v51 = vpack.c.bf16 %v2023_v57, %v2022_v42  ;;  %v3863_v50 = vld [vmem:[%s3993_s2 + $0x6] ss:$0 sm:$0xff]  ;;  %v2031_v3 = vld [vmem:[#allocation2 + $0x3c8] sm:$0xff] }
 0x861   : > { %v1673_v2 = vmul.f32 0.015625, %v1665_v62  ;;  %v1663_v53 = vpop.xlane.xlu1 %1662  ;;  %v1750_v10 = vmax.f32 %v1742_v11, 0.0  ;;  %v3016_v21 = vpack.c.bf16 %v2027_v1, %v2026_v0  ;;  %v3020_v7 = vpack.c.bf16 %v2029_v5, %v2028_v16  ;;  %v2032_v11 = vld [vmem:[#allocation2 + $0x3d0] sm:$0xff] }
 0x862   : > { %v1672_v19 = vmul.f32 0.015625, %v1663_v53  ;;  %3009 = vmatprep.subr.bf16.mxu0 %v3008_v51  ;;  %v3024_v62 = vpack.c.bf16 %v2031_v3, %v2030_v8 }
 0x863   : > { %v1689_v31 = vsub.f32 %v1673_v2, %v1681_v63  ;;  %2791 = vmatprep.mubr.f32.mxu1 %v1750_v10  ;;  %3011 = vmatpush3.bf16.msra.mxu0 %v3008_v51  ;;  %v2033_v63 = vld [vmem:[#allocation2 + $0x3d8] sm:$0xff] }
 0x864   : > { %v1688_v9 = vsub.f32 %v1672_v19, %v1680_v26  ;;  %2792 = vmatmul.mubr.f32.gmra.mrb[18].mxu1 %v1751_v48  ;;  %3013 = vmatprep.subr.bf16.mxu0 %v3012_v55  ;;  %v3028_v53 = vpack.c.bf16 %v2033_v63, %v2032_v11  ;;  %v2035_v48 = vld [vmem:[#allocation2 + $0x3e8] sm:$0xff] }
 0x865   : > { %v1697_v27 = vadd.f32 1e-05, %v1689_v31  ;;  %v2034_v31 = vld [vmem:[#allocation2 + $0x3e0] sm:$0xff] }
 0x866   : > { %v1696_v20 = vadd.f32 1e-05, %v1688_v9  ;;  %v3032_v9 = vpack.c.bf16 %v2035_v48, %v2034_v31 }
 0x867   : > { %3154 = vrsqrt.f32 %v1697_v27  ;;  %3015 = vmatpush3.bf16.msra.mxu0 %v3012_v55  ;;  %v3925_v55 = vld [vmem:[%s3995_s4 + $0x5] ss:$0 sm:$0xff] }
 0x868   : > { %v3151_v12 = vpop.eup %3150  ;;  %3156 = vrsqrt.f32 %v1696_v20  ;;  %3017 = vmatprep.subr.bf16.mxu0 %v3016_v21 }
 0x869   : > { %v3153_v24 = vpop.eup %3152  ;;  %v1716_v61 = vmul.f32 %v3151_v12, %v3829_v14  ;;  %v2036_v12 = vld [vmem:[#allocation2 + $0x3f0] sm:$0xff] }
 0x86a   : > { %v1715_v34 = vmul.f32 %v3153_v24, %v3829_v14  ;;  %v2037_v24 = vld [vmem:[#allocation2 + $0x3f8] sm:$0xff] }
 0x86b   : > { %v1732_v35 = vmul.f32 %v1724_v25, %v1716_v61  ;;  %3019 = vmatpush3.bf16.msra.mxu0 %v3016_v21  ;;  %v3036_v25 = vpack.c.bf16 %v2037_v24, %v2036_v12 }
 0x86c   : > { %v1731_v18 = vmul.f32 %v1723_v33, %v1715_v34  ;;  %3021 = vmatprep.subr.bf16.mxu0 %v3020_v7 }
 0x86d   : > { %v1745_v28 = vadd.f32 %v3838_v23, %v1732_v35 }
 0x86e   : > { %v1744_v39 = vadd.f32 %v3838_v23, %v1731_v18 }
 0x86f   : > { %v1753_v43 = vmax.f32 %v1745_v28, 0.0  ;;  %3023 = vmatpush3.bf16.msra.mxu0 %v3020_v7 }
 0x870   : > { %v1752_v36 = vmax.f32 %v1744_v39, 0.0  ;;  %3025 = vmatprep.subr.bf16.mxu0 %v3024_v62 }
 0x871   : > { %v3155_v60 = vpop.eup %3154 }
 0x872   : > { %v3157_v17 = vpop.eup %3156  ;;  %2794 = vmatprep.mubr.f32.mxu1 %v1752_v36  ;;  %v1718_v40 = vmul.f32 %v3155_v60, %v3829_v14 }
 0x873   : > { %2795 = vmatmul.mubr.f32.gmra.mrb[20].mxu1 %v1753_v43  ;;  %v1717_v56 = vmul.f32 %v3157_v17, %v3829_v14  ;;  %3027 = vmatpush3.bf16.msra.mxu0 %v3024_v62 }
 0x874   : > { %v1734_v22 = vmul.f32 %v1726_v44, %v1718_v40  ;;  %3029 = vmatprep.subr.bf16.mxu0 %v3028_v53 }
 0x875   : > { %v1733_v46 = vmul.f32 %v1725_v45, %v1717_v56 }
 0x876   : > { %v1747_v37 = vadd.f32 %v3838_v23, %v1734_v22 }
 0x877   : > { %v1746_v38 = vadd.f32 %v3838_v23, %v1733_v46  ;;  %3031 = vmatpush3.bf16.msra.mxu0 %v3028_v53 }
 0x878   : > { %v1755_v41 = vmax.f32 %v1747_v37, 0.0  ;;  %3033 = vmatprep.subr.bf16.mxu0 %v3032_v9 }
 0x879   : > { %v1754_v30 = vmax.f32 %v1746_v38, 0.0 }
 0x87b   : > { %2797 = vmatprep.mubr.f32.mxu1 %v1754_v30  ;;  %3035 = vmatpush3.bf16.msra.mxu0 %v3032_v9 }
 0x87c   : > { %2798 = vmatmul.mubr.f32.gmra.mrb[22].mxu1 %v1755_v41  ;;  %3037 = vmatprep.subr.bf16.mxu0 %v3036_v25  ;;  %v3916_v41 = vld [vmem:[%s3994_s3 + $0x5] ss:$0 sm:$0xff] }
 0x87f   : > { %3039 = vmatpush3.bf16.msra.mxu0 %v3036_v25 }
 0x923   : > { %v2790_v14 = vpop.f32.mrb[16].mxu1 }
 0x924   : > { %v3866_v13 = vadd.f32 %v2790_v14, %v3863_v50  ;;  %v1844_v52 = vpop.f32.mrb[17].mxu1 }
 0x925   : > { %v3869_v23 = vadd.f32 %v3863_v50, %v1844_v52 }
 0x926   : > { %1885 = vadd.xlane.f32.xlu0 %v3866_v13  ;;  %v1908_v47 = vmul.f32 %v3866_v13, %v3866_v13 }
 0x927   : > { %1883 = vadd.xlane.f32.xlu1 %v3869_v23  ;;  %v1907_v49 = vmul.f32 %v3869_v23, %v3869_v23 }
 0x92a   : > { %1917 = vadd.xlane.f32.xlu0 %v1908_v47 }
 0x92b   : > { %1915 = vadd.xlane.f32.xlu1 %v1907_v49 }
 0x937   : > { %v2793_v58 = vpop.f32.mrb[18].mxu1 }
 0x938   : > { %v3878_v59 = vadd.f32 %v2793_v58, %v3863_v50  ;;  %v1854_v15 = vpop.f32.mrb[19].mxu1 }
 0x939   : > { %v3881_v4 = vadd.f32 %v3863_v50, %v1854_v15 }
 0x93a   : > { %1889 = vadd.xlane.f32.xlu0 %v3878_v59  ;;  %v1910_v29 = vmul.f32 %v3878_v59, %v3878_v59 }
 0x93b   : > { %1887 = vadd.xlane.f32.xlu1 %v3881_v4  ;;  %v1909_v6 = vmul.f32 %v3881_v4, %v3881_v4 }
 0x93e   : > { %1921 = vadd.xlane.f32.xlu0 %v1910_v29 }
 0x93f   : > { %1919 = vadd.xlane.f32.xlu1 %v1909_v6 }
 0x946   : > { %v2796_v2 = vpop.f32.mrb[20].mxu1 }
 0x947   : > { %v3890_v26 = vadd.f32 %v2796_v2, %v3863_v50  ;;  %v1864_v19 = vpop.f32.mrb[21].mxu1 }
 0x948   : > { %v3893_v10 = vadd.f32 %v3863_v50, %v1864_v19 }
 0x949   : > { %1893 = vadd.xlane.f32.xlu0 %v3890_v26  ;;  %v1912_v27 = vmul.f32 %v3890_v26, %v3890_v26 }
 0x94a   : > { %1891 = vadd.xlane.f32.xlu1 %v3893_v10  ;;  %v1911_v20 = vmul.f32 %v3893_v10, %v3893_v10 }
 0x94d   : > { %1925 = vadd.xlane.f32.xlu0 %v1912_v27 }
 0x94e   : > { %1923 = vadd.xlane.f32.xlu1 %v1911_v20 }
 0x94f   : > { %v2799_v61 = vpop.f32.mrb[22].mxu1 }
 0x950   : > { %v3902_v33 = vadd.f32 %v2799_v61, %v3863_v50  ;;  %v1874_v34 = vpop.f32.mrb[23].mxu1 }
 0x951   : > { %v3905_v35 = vadd.f32 %v3863_v50, %v1874_v34 }
 0x952   : > { %1897 = vadd.xlane.f32.xlu0 %v3902_v33  ;;  %v1914_v18 = vmul.f32 %v3902_v33, %v3902_v33 }
 0x953   : > { %1895 = vadd.xlane.f32.xlu1 %v3905_v35  ;;  %v1913_v28 = vmul.f32 %v3905_v35, %v3905_v35 }
 0x956   : > { %1929 = vadd.xlane.f32.xlu0 %v1914_v18 }
 0x957   : > { %1927 = vadd.xlane.f32.xlu1 %v1913_v28 }
 0x9b3   : > { %v1886_v39 = vpop.xlane.xlu0 %1885 }
 0x9b4   : > { %v1900_v36 = vmul.f32 0.0125, %v1886_v39  ;;  %v1884_v60 = vpop.xlane.xlu1 %1883 }
 0x9b5   : > { %v1899_v43 = vmul.f32 0.0125, %v1884_v60 }
 0x9b6   : > { %v1940_v44 = vmul.f32 %v1900_v36, %v1900_v36  ;;  %v1985_v50 = vsub.f32 %v3866_v13, %v1900_v36 }
 0x9b7   : > { %v1918_v17 = vpop.xlane.xlu0 %1917  ;;  %v1939_v56 = vmul.f32 %v1899_v43, %v1899_v43  ;;  %v1984_v49 = vsub.f32 %v3869_v23, %v1899_v43 }
 0x9b8   : > { %v1932_v40 = vmul.f32 0.0125, %v1918_v17  ;;  %v1916_v45 = vpop.xlane.xlu1 %1915 }
 0x9b9   : > { %v1931_v22 = vmul.f32 0.0125, %v1916_v45 }
 0x9ba   : > { %v1948_v46 = vsub.f32 %v1932_v40, %v1940_v44 }
 0x9bb   : > { %v1947_v37 = vsub.f32 %v1931_v22, %v1939_v56 }
 0x9bc   : > { %v1956_v38 = vadd.f32 1e-05, %v1948_v46 }
 0x9bd   : > { %v1955_v30 = vadd.f32 1e-05, %v1947_v37 }
 0x9be   : > { %3158 = vrsqrt.f32 %v1956_v38 }
 0x9bf   : > { %3160 = vrsqrt.f32 %v1955_v30 }
 0x9c7   : > { %v1890_v57 = vpop.xlane.xlu0 %1889 }
 0x9c8   : > { %v3159_v42 = vpop.eup %3158  ;;  %v1902_v52 = vmul.f32 0.0125, %v1890_v57  ;;  %v1888_v47 = vpop.xlane.xlu1 %1887 }
 0x9c9   : > { %v3161_v51 = vpop.eup %3160  ;;  %v1977_v14 = vmul.f32 %v3159_v42, %v3916_v41  ;;  %v1901_v32 = vmul.f32 0.0125, %v1888_v47 }
 0x9ca   : > { %v1976_v54 = vmul.f32 %v3161_v51, %v3916_v41  ;;  %v1942_v1 = vmul.f32 %v1902_v52, %v1902_v52  ;;  %v1987_v34 = vsub.f32 %v3878_v59, %v1902_v52 }
 0x9cb   : > { %v1993_v58 = vmul.f32 %v1985_v50, %v1977_v14  ;;  %v1922_v15 = vpop.xlane.xlu0 %1921  ;;  %v1941_v16 = vmul.f32 %v1901_v32, %v1901_v32  ;;  %v1986_v39 = vsub.f32 %v3881_v4, %v1901_v32 }
 0x9cc   : > { %v1992_v0 = vmul.f32 %v1984_v49, %v1976_v54  ;;  %v1934_v21 = vmul.f32 0.0125, %v1922_v15  ;;  %v1920_v13 = vpop.xlane.xlu1 %1919 }
 0x9cd   : > { %v2006_v29 = vadd.f32 %v3925_v55, %v1993_v58  ;;  %v1933_v5 = vmul.f32 0.0125, %v1920_v13 }
 0x9ce   : > { %v2005_v23 = vadd.f32 %v3925_v55, %v1992_v0  ;;  %v1950_v6 = vsub.f32 %v1934_v21, %v1942_v1 }
 0x9cf   : > { %v1949_v7 = vsub.f32 %v1933_v5, %v1941_v16  ;;  %v2014_v62 = vmax.f32 %v2006_v29, 0.0 }
 0x9d0   : > { %v2013_v8 = vmax.f32 %v2005_v23, 0.0  ;;  %v1958_v3 = vadd.f32 1e-05, %v1950_v6 }
 0x9d1   : > { %v1957_v11 = vadd.f32 1e-05, %v1949_v7 }
 0x9d2   : > { %2832 = vmatprep.mubr.f32.mxu0 %v2013_v8  ;;  %3162 = vrsqrt.f32 %v1958_v3 }
 0x9d3   : > { %2833 = vmatmul.mubr.f32.vlgmr.msra.gmra.mrb[24].mxu0 %v2014_v62  ;;  %3164 = vrsqrt.f32 %v1957_v11 }
 0x9d6   : > { %v1894_v63 = vpop.xlane.xlu0 %1893 }
 0x9d7   : > { %v1904_v2 = vmul.f32 0.0125, %v1894_v63  ;;  %v1892_v53 = vpop.xlane.xlu1 %1891 }
 0x9d8   : > { %v1903_v19 = vmul.f32 0.0125, %v1892_v53 }
 0x9d9   : > { %v1944_v48 = vmul.f32 %v1904_v2, %v1904_v2  ;;  %v1989_v58 = vsub.f32 %v3890_v26, %v1904_v2 }
 0x9da   : > { %v1926_v31 = vpop.xlane.xlu0 %1925  ;;  %v1943_v20 = vmul.f32 %v1903_v19, %v1903_v19  ;;  %v1988_v0 = vsub.f32 %v3893_v10, %v1903_v19 }
 0x9db   : > { %v1936_v9 = vmul.f32 0.0125, %v1926_v31  ;;  %v1924_v27 = vpop.xlane.xlu1 %1923  ;;  %v2148_v31 = vlaneseq }
 0x9dc   : > { %v1935_v12 = vmul.f32 0.0125, %v1924_v27  ;;  %v3163_v24 = vpop.eup %3162 }
 0x9dd   : > { %v1952_v25 = vsub.f32 %v1936_v9, %v1944_v48  ;;  %v3165_v61 = vpop.eup %3164  ;;  %v1979_v28 = vmul.f32 %v3163_v24, %v3916_v41  ;;  %v2407_v48 = vld [vmem:[%s3993_s2 + $0x7] ss:$0 sm:$0xff] }
 0x9de   : > { %v1951_v18 = vsub.f32 %v1935_v12, %v1943_v20  ;;  %v1978_v43 = vmul.f32 %v3165_v61, %v3916_v41 }
 0x9df   : > { %v1960_v36 = vadd.f32 1e-05, %v1952_v25  ;;  %v1898_v60 = vpop.xlane.xlu0 %1897  ;;  %v1995_v45 = vmul.f32 %v1987_v34, %v1979_v28 }
 0x9e0   : > { %v1959_v17 = vadd.f32 1e-05, %v1951_v18  ;;  %v1906_v44 = vmul.f32 0.0125, %v1898_v60  ;;  %v1896_v40 = vpop.xlane.xlu1 %1895  ;;  %v1994_v22 = vmul.f32 %v1986_v39, %v1978_v43 }
 0x9e1   : > { %3166 = vrsqrt.f32 %v1960_v36  ;;  %v1905_v56 = vmul.f32 0.0125, %v1896_v40  ;;  %v2008_v46 = vadd.f32 %v3925_v55, %v1995_v45 }
 0x9e2   : > { %3168 = vrsqrt.f32 %v1959_v17  ;;  %v2007_v37 = vadd.f32 %v3925_v55, %v1994_v22  ;;  %v1946_v38 = vmul.f32 %v1906_v44, %v1906_v44  ;;  %v1991_v8 = vsub.f32 %v3902_v33, %v1906_v44 }
 0x9e3   : > { %v1930_v59 = vpop.xlane.xlu0 %1929  ;;  %v1945_v42 = vmul.f32 %v1905_v56, %v1905_v56  ;;  %v2016_v14 = vmax.f32 %v2008_v46, 0.0  ;;  %v1990_v3 = vsub.f32 %v3905_v35, %v1905_v56  ;;  %v2149_v33 = vand.u32 127, %v2148_v31 }
 0x9e4   : > { %v1938_v30 = vmul.f32 0.0125, %v1930_v59  ;;  %v1928_v4 = vpop.xlane.xlu1 %1927  ;;  %v2015_v51 = vmax.f32 %v2007_v37, 0.0 }
 0x9e5   : > { %v1937_v57 = vmul.f32 0.0125, %v1928_v4  ;;  %vm2150_vm2 = vcmp.lt.s32.totalorder %v2149_v33, 16 }
 0x9e6   : > { %v1954_v50 = vsub.f32 %v1938_v30, %v1946_v38  ;;  %2835 = vmatprep.mubr.f32.mxu0 %v2015_v51 }
 0x9e7   : > { %v1953_v52 = vsub.f32 %v1937_v57, %v1945_v42  ;;  %2836 = vmatmul.mubr.f32.gmra.mrb[26].mxu0 %v2016_v14 }
 0x9e8   : > { %v1962_v47 = vadd.f32 1e-05, %v1954_v50 }
 0x9e9   : > { %v1961_v49 = vadd.f32 1e-05, %v1953_v52 }
 0x9ea   : > { %3170 = vrsqrt.f32 %v1962_v47 }
 0x9eb   : > { %v3167_v32 = vpop.eup %3166  ;;  %3172 = vrsqrt.f32 %v1961_v49 }
 0x9ec   : > { %v3169_v54 = vpop.eup %3168  ;;  %v1981_v15 = vmul.f32 %v3167_v32, %v3916_v41 }
 0x9ed   : > { %v1980_v1 = vmul.f32 %v3169_v54, %v3916_v41 }
 0x9ee   : > { %v1997_v21 = vmul.f32 %v1989_v58, %v1981_v15 }
 0x9ef   : > { %v1996_v13 = vmul.f32 %v1988_v0, %v1980_v1 }
 0x9f0   : > { %v2010_v29 = vadd.f32 %v3925_v55, %v1997_v21 }
 0x9f1   : > { %v2009_v16 = vadd.f32 %v3925_v55, %v1996_v13 }
 0x9f2   : > { %v2018_v6 = vmax.f32 %v2010_v29, 0.0 }
 0x9f3   : > { %v2017_v5 = vmax.f32 %v2009_v16, 0.0 }
 0x9f4   : > { %v3171_v23 = vpop.eup %3170 }
 0x9f5   : > { %v3173_v7 = vpop.eup %3172  ;;  %2838 = vmatprep.mubr.f32.mxu0 %v2017_v5  ;;  %v1983_v26 = vmul.f32 %v3171_v23, %v3916_v41 }
 0x9f6   : > { %2839 = vmatmul.mubr.f32.gmra.mrb[28].mxu0 %v2018_v6  ;;  %v1982_v10 = vmul.f32 %v3173_v7, %v3916_v41 }
 0x9f7   : > { %v1999_v62 = vmul.f32 %v1991_v8, %v1983_v26 }
 0x9f8   : > { %v1998_v11 = vmul.f32 %v1990_v3, %v1982_v10 }
 0x9f9   : > { %v2012_v63 = vadd.f32 %v3925_v55, %v1999_v62 }
 0x9fa   : > { %v2011_v2 = vadd.f32 %v3925_v55, %v1998_v11 }
 0x9fb   : > { %v2020_v19 = vmax.f32 %v2012_v63, 0.0 }
 0x9fc   : > { %v2019_v53 = vmax.f32 %v2011_v2, 0.0 }
 0x9fe   : > { %2841 = vmatprep.mubr.f32.mxu0 %v2019_v53 }
 0x9ff   : > { %2842 = vmatmul.mubr.f32.gmra.mrb[30].mxu0 %v2020_v19 }
 0xaa6   : > { %v2834_v35 = vpop.f32.mrb[24].mxu0 }
 0xaa7   : > { %v2115_v9 = vadd.f32 %v2834_v35, %v2407_v48  ;;  %v2109_v41 = vpop.f32.mrb[25].mxu0 }
 0xaa8   : > { %v2110_v27 = vadd.f32 %v2407_v48, %v2109_v41 }
 0xaa9   : > { %v2152_v20 = vsel %vm2150_vm2, %v2115_v9, -1e+30 }
 0xaaa   : > { %2161 = vmax.xlane.f32.xlu0 %v2152_v20  ;;  %v2151_v55 = vsel %vm2150_vm2, %v2110_v27, -1e+30 }
 0xaab   : > { %2159 = vmax.xlane.f32.xlu1 %v2151_v55 }
 0xaba   : > { %v2837_v12 = vpop.f32.mrb[26].mxu0 }
 0xabb   : > { %v2125_v24 = vadd.f32 %v2837_v12, %v2407_v48  ;;  %v2119_v25 = vpop.f32.mrb[27].mxu0 }
 0xabc   : > { %v2120_v61 = vadd.f32 %v2407_v48, %v2119_v25 }
 0xabd   : > { %v2154_v34 = vsel %vm2150_vm2, %v2125_v24, -1e+30 }
 0xabe   : > { %2165 = vmax.xlane.f32.xlu0 %v2154_v34  ;;  %v2153_v18 = vsel %vm2150_vm2, %v2120_v61, -1e+30 }
 0xabf   : > { %2163 = vmax.xlane.f32.xlu1 %v2153_v18 }
 0xac9   : > { %v2840_v28 = vpop.f32.mrb[28].mxu0 }
 0xaca   : > { %v2135_v39 = vadd.f32 %v2840_v28, %v2407_v48  ;;  %v2129_v36 = vpop.f32.mrb[29].mxu0 }
 0xacb   : > { %v2130_v60 = vadd.f32 %v2407_v48, %v2129_v36 }
 0xacc   : > { %v2156_v43 = vsel %vm2150_vm2, %v2135_v39, -1e+30 }
 0xacd   : > { %2169 = vmax.xlane.f32.xlu0 %v2156_v43  ;;  %v2155_v17 = vsel %vm2150_vm2, %v2130_v60, -1e+30 }
 0xace   : > { %2167 = vmax.xlane.f32.xlu1 %v2155_v17 }
 0xad2   : > { %v2843_v44 = vpop.f32.mrb[30].mxu0 }
 0xad3   : > { %v2145_v40 = vadd.f32 %v2843_v44, %v2407_v48  ;;  %v2139_v45 = vpop.f32.mrb[31].mxu0 }
 0xad4   : > { %v2140_v56 = vadd.f32 %v2407_v48, %v2139_v45 }
 0xad5   : > { %v2158_v22 = vsel %vm2150_vm2, %v2145_v40, -1e+30 }
 0xad6   : > { %2173 = vmax.xlane.f32.xlu0 %v2158_v22  ;;  %v2157_v46 = vsel %vm2150_vm2, %v2140_v56, -1e+30 }
 0xad7   : > { %2171 = vmax.xlane.f32.xlu1 %v2157_v46 }
 0xb37   : > { %v2162_v59 = vpop.xlane.xlu0 %2161 }
 0xb38   : > { %v2176_v37 = vsub.f32 %v2152_v20, %v2162_v59  ;;  %v2160_v38 = vpop.xlane.xlu1 %2159 }
 0xb39   : > { %v2175_v30 = vsub.f32 %v2151_v55, %v2160_v38 }
 0xb3a   : > { %v2185_v4 = vmul.f32 1.442695, %v2176_v37 }
 0xb3b   : > { %v2183_v42 = vmul.f32 1.442695, %v2175_v30 }
 0xb3c   : > { %3174 = vpow2.f32 %v2185_v4 }
 0xb3d   : > { %3176 = vpow2.f32 %v2183_v42 }
 0xb46   : > { %v3175_v57 = vpop.eup %3174 }
 0xb47   : > { %v3177_v51 = vpop.eup %3176  ;;  %2201 = vadd.xlane.f32.xlu0 %v3175_v57 }
 0xb48   : > { %2199 = vadd.xlane.f32.xlu1 %v3177_v51 }
 0xb4b   : > { %v2166_v50 = vpop.xlane.xlu0 %2165 }
 0xb4c   : > { %v2178_v14 = vsub.f32 %v2154_v34, %v2166_v50  ;;  %v2164_v52 = vpop.xlane.xlu1 %2163 }
 0xb4d   : > { %v2177_v47 = vsub.f32 %v2153_v18, %v2164_v52 }
 0xb4e   : > { %v2189_v49 = vmul.f32 1.442695, %v2178_v14 }
 0xb4f   : > { %v2187_v32 = vmul.f32 1.442695, %v2177_v47 }
 0xb50   : > { %3178 = vpow2.f32 %v2189_v49 }
 0xb51   : > { %3180 = vpow2.f32 %v2187_v32 }
 0xb5a   : > { %v2170_v54 = vpop.xlane.xlu0 %2169  ;;  %v3179_v58 = vpop.eup %3178 }
 0xb5b   : > { %v2180_v15 = vsub.f32 %v2156_v43, %v2170_v54  ;;  %v2168_v0 = vpop.xlane.xlu1 %2167  ;;  %v3181_v1 = vpop.eup %3180  ;;  %2205 = vadd.xlane.f32.xlu0 %v3179_v58 }
 0xb5c   : > { %v2179_v21 = vsub.f32 %v2155_v17, %v2168_v0  ;;  %2203 = vadd.xlane.f32.xlu1 %v3181_v1 }
 0xb5d   : > { %v2193_v13 = vmul.f32 1.442695, %v2180_v15 }
 0xb5e   : > { %v2191_v29 = vmul.f32 1.442695, %v2179_v21 }
 0xb5f   : > { %3182 = vpow2.f32 %v2193_v13 }
 0xb60   : > { %3184 = vpow2.f32 %v2191_v29 }
 0xb63   : > { %v2174_v16 = vpop.xlane.xlu0 %2173 }
 0xb64   : > { %v2182_v5 = vsub.f32 %v2158_v22, %v2174_v16  ;;  %v2172_v23 = vpop.xlane.xlu1 %2171 }
 0xb65   : > { %v2181_v6 = vsub.f32 %v2157_v46, %v2172_v23 }
 0xb66   : > { %v2197_v7 = vmul.f32 1.442695, %v2182_v5 }
 0xb67   : > { %v2195_v8 = vmul.f32 1.442695, %v2181_v6 }
 0xb68   : > { %3186 = vpow2.f32 %v2197_v7 }
 0xb69   : > { %v3183_v26 = vpop.eup %3182  ;;  %3188 = vpow2.f32 %v2195_v8 }
 0xb6a   : > { %v3185_v3 = vpop.eup %3184  ;;  %2209 = vadd.xlane.f32.xlu0 %v3183_v26 }
 0xb6b   : > { %2207 = vadd.xlane.f32.xlu1 %v3185_v3 }
 0xb72   : > { %v3958_v10 = vpop.eup %3186 }
 0xb73   : > { %v3960_v62 = vpop.eup %3188  ;;  %2213 = vadd.xlane.f32.xlu0 %v3958_v10 }
 0xb74   : > { %2211 = vadd.xlane.f32.xlu1 %v3960_v62 }
 0xbd4   : > { %v2202_v11 = vpop.xlane.xlu0 %2201 }
 0xbd5   : > { %3190 = vrcp.f32 %v2202_v11  ;;  %v2200_v63 = vpop.xlane.xlu1 %2199 }
 0xbd6   : > { %3192 = vrcp.f32 %v2200_v63 }
 0xbdf   : > { %v3191_v2 = vpop.eup %3190 }
 0xbe0   : > { %v3193_v53 = vpop.eup %3192  ;;  %v2224_v19 = vmul.f32 %v3191_v2, %v2202_v11 }
 0xbe1   : > { %v2223_v31 = vmul.f32 %v3193_v53, %v2200_v63 }
 0xbe2   : > { %v2232_v33 = vsub.f32 2.0, %v2224_v19 }
 0xbe3   : > { %v2231_v48 = vsub.f32 2.0, %v2223_v31 }
 0xbe4   : > { %v2240_v35 = vmul.f32 %v3191_v2, %v2232_v33 }
 0xbe5   : > { %v2239_v9 = vmul.f32 %v3193_v53, %v2231_v48 }
 0xbe6   : > { %v2248_v41 = vmul.f32 %v3175_v57, %v2240_v35 }
 0xbe7   : > { %v2247_v27 = vmul.f32 %v3177_v51, %v2239_v9 }
 0xbe8   : > { %2256 = vst.msk [vmem:[%s3968_s23 + $0x8] sm:$0xff] %vm299_vm0, %v2248_v41  ;;  %v2206_v20 = vpop.xlane.xlu0 %2205 }
 0xbe9   : > { %2255 = vst.msk [vmem:[%s3968_s23] sm:$0xff] %vm299_vm0, %v2247_v27  ;;  %3194 = vrcp.f32 %v2206_v20  ;;  %v2204_v55 = vpop.xlane.xlu1 %2203 }
 0xbea   : > { %3196 = vrcp.f32 %v2204_v55 }
 0xbf3   : > { %v3195_v12 = vpop.eup %3194 }
 0xbf4   : > { %v3197_v24 = vpop.eup %3196  ;;  %v2226_v25 = vmul.f32 %v3195_v12, %v2206_v20 }
 0xbf5   : > { %v2225_v61 = vmul.f32 %v3197_v24, %v2204_v55 }
 0xbf6   : > { %v2234_v34 = vsub.f32 2.0, %v2226_v25 }
 0xbf7   : > { %v2210_v18 = vpop.xlane.xlu0 %2209  ;;  %v2233_v28 = vsub.f32 2.0, %v2225_v61 }
 0xbf8   : > { %3198 = vrcp.f32 %v2210_v18  ;;  %v2208_v39 = vpop.xlane.xlu1 %2207  ;;  %v2242_v36 = vmul.f32 %v3195_v12, %v2234_v34 }
 0xbf9   : > { %3200 = vrcp.f32 %v2208_v39  ;;  %v2241_v60 = vmul.f32 %v3197_v24, %v2233_v28 }
 0xbfa   : > { %v2250_v43 = vmul.f32 %v3179_v58, %v2242_v36 }
 0xbfb   : > { %v2249_v17 = vmul.f32 %v3181_v1, %v2241_v60 }
 0xbfc   : > { %2258 = vst.msk [vmem:[%s3968_s23 + $0x18] sm:$0xff] %vm299_vm0, %v2250_v43 }
 0xbfd   : > { %2257 = vst.msk [vmem:[%s3968_s23 + $0x10] sm:$0xff] %vm299_vm0, %v2249_v17 }
 0xc00   : > { %v2214_v44 = vpop.xlane.xlu0 %2213 }
 0xc01   : > { %3202 = vrcp.f32 %v2214_v44  ;;  %v2212_v40 = vpop.xlane.xlu1 %2211 }
 0xc02   : > { %v3199_v45 = vpop.eup %3198  ;;  %3204 = vrcp.f32 %v2212_v40 }
 0xc03   : > { %v3201_v56 = vpop.eup %3200  ;;  %v2228_v22 = vmul.f32 %v3199_v45, %v2210_v18 }
 0xc04   : > { %v2227_v46 = vmul.f32 %v3201_v56, %v2208_v39 }
 0xc05   : > { %v2236_v59 = vsub.f32 2.0, %v2228_v22 }
 0xc06   : > { %v2235_v37 = vsub.f32 2.0, %v2227_v46 }
 0xc07   : > { %v2244_v38 = vmul.f32 %v3199_v45, %v2236_v59 }
 0xc08   : > { %v2243_v30 = vmul.f32 %v3201_v56, %v2235_v37 }
 0xc09   : > { %v2252_v4 = vmul.f32 %v3183_v26, %v2244_v38 }
 0xc0a   : > { %v2251_v42 = vmul.f32 %v3185_v3, %v2243_v30 }
 0xc0b   : > { %v3203_v57 = vpop.eup %3202  ;;  %2260 = vst.msk [vmem:[%s3968_s23 + $0x28] sm:$0xff] %vm299_vm0, %v2252_v4 }
 0xc0c   : > { %v3205_v51 = vpop.eup %3204  ;;  %2259 = vst.msk [vmem:[%s3968_s23 + $0x20] sm:$0xff] %vm299_vm0, %v2251_v42  ;;  %v2230_v50 = vmul.f32 %v3203_v57, %v2214_v44 }
 0xc0d   : > { %v2229_v14 = vmul.f32 %v3205_v51, %v2212_v40 }
 0xc0e   : > { %v2238_v52 = vsub.f32 2.0, %v2230_v50 }
 0xc0f   : > { %v2237_v47 = vsub.f32 2.0, %v2229_v14 }
 0xc10   : > { %v2246_v49 = vmul.f32 %v3203_v57, %v2238_v52 }
 0xc11   : > { %v2245_v32 = vmul.f32 %v3205_v51, %v2237_v47 }
 0xc12   : > { %v2254_v54 = vmul.f32 %v3958_v10, %v2246_v49 }
 0xc13   : > { %v2253_v58 = vmul.f32 %v3960_v62, %v2245_v32 }
 0xc14   : > { %2262 = vst.msk [vmem:[%s3968_s23 + $0x38] sm:$0xff] %vm299_vm0, %v2254_v54 }
 0xc15   : > { %2261 = vst.msk [vmem:[%s3968_s23 + $0x30] sm:$0xff] %vm299_vm0, %v2253_v58 }
 0xc16 PF: > { %s18_s21 = sadd.s32 1, %s3244_s21  }
 0xc17   : > { %p15_p3 = scmp.ge.s32.totalorder %s18_s21, 6  }
 0xc19   :  { %17 = sbr.rel (!%p15_p3) target bundleno = 1 (0x1), region = 94 }
 0xc20   :  { %2302 = vsyncpa [#allocation3], 1 }
 0xc21   :  { %2304 = vsyncpa [#allocation3 + $0x1], 1 }

</bundles_post_ra>
